<compile_context>
chip_gen: v7x
topology: tpu7x:2x2x1
jax: 0.10.0
libtpu: 0.0.40
codegen_flags: <defaults>
</compile_context>

<pallas_src>
import functools

import numpy as np
import jax
import jax.numpy as jnp
from jax.experimental import pallas as pl
from jax.experimental.pallas import tpu as pltpu

WINDOW_SIZE = 11
SIGMA = 1.5
PAD = WINDOW_SIZE // 2
C1 = 0.01 ** 2
C2 = 0.03 ** 2
NUM_MAPS = 5          # p, g, p*p, g*g, p*g


def _gaussian_1d(window_size=WINDOW_SIZE, sigma=SIGMA):
    # Deterministic "parameter" of pytorch_ssim: normalized 1D gaussian.
    x = np.arange(window_size, dtype=np.float64)
    g = np.exp(-((x - window_size // 2) ** 2) / (2.0 * sigma ** 2))
    return g / g.sum()


_G1D = _gaussian_1d()
_WIN = np.outer(_G1D, _G1D).astype(np.float32)   # (11, 11), used by the reference


def _band_matrices(H, W):
    """Band matrices so that  A @ x @ B == conv2d(x, outer(g,g), 'same', zero pad)."""
    g = _G1D
    A = np.zeros((H, H), dtype=np.float64)   # left factor: output rows
    for i in range(H):
        for r in range(max(0, i - PAD), min(H, i + PAD + 1)):
            A[i, r] = g[r - i + PAD]
    B = np.zeros((W, W), dtype=np.float64)   # right factor: output cols
    for j in range(W):
        for c in range(max(0, j - PAD), min(W, j + PAD + 1)):
            B[c, j] = g[c - j + PAD]
    return A.astype(np.float32), B.astype(np.float32)


_MATMUL_PRECISION = None


def _matmul_precision():
    """HIGH (bf16x3 MXU passes, review item) if the Mosaic dot lowering accepts it,
    otherwise fall back to HIGHEST so the kernel always compiles."""
    global _MATMUL_PRECISION
    if _MATMUL_PRECISION is None:
        def probe(x_ref, y_ref, o_ref):
            o_ref[...] = jnp.dot(x_ref[...], y_ref[...],
                                 preferred_element_type=jnp.float32,
                                 precision=jax.lax.Precision.HIGH)
        try:
            x = jnp.ones((128, 128), jnp.float32)
            jax.block_until_ready(
                pl.pallas_call(
                    probe,
                    out_shape=jax.ShapeDtypeStruct((128, 128), jnp.float32))(x, x))
            _MATMUL_PRECISION = jax.lax.Precision.HIGH
        except Exception:
            _MATMUL_PRECISION = jax.lax.Precision.HIGHEST
    return _MATMUL_PRECISION


def _dssim_l1_kernel(a_ref, b_ref, pred_ref, gt_ref, l1_ref, ssim_ref, *, precision):
    # a_ref: (C*H, C*H) block-diagonal vertical band matrix (per-channel A).
    # b_ref: (5*W, 5*W) block-diagonal horizontal band matrix (per-map B).
    # pred_ref / gt_ref: (1, C, H, W) -- one whole image per grid step.
    # l1_ref / ssim_ref: (1, 1, 128) lane-dense per-image scalar outputs.
    _, C, H, W = pred_ref.shape

    p = pred_ref[...].reshape(C * H, W)
    g = gt_ref[...].reshape(C * H, W)

    # L1 term of the loss map: 2 * |pred - gt|, summed over the whole image.
    l1_sum = jnp.sum(2.0 * jnp.abs(p - g))

    # Lane-stacked slab holding the 5 maps the SSIM conv needs (all channels).
    stacked = jnp.concatenate([p, g, p * p, g * g, p * g], axis=1)   # (C*H, 5*W)

    # Depthwise separable 11x11 gaussian 'same' conv for all C channels x 5 maps
    # as exactly two fat MXU matmuls (vertical pass, then horizontal pass).
    t = jnp.dot(a_ref[...], stacked,
                preferred_element_type=jnp.float32, precision=precision)
    u = jnp.dot(t, b_ref[...],
                preferred_element_type=jnp.float32, precision=precision)

    mu1 = u[:, 0 * W:1 * W]
    mu2 = u[:, 1 * W:2 * W]
    s11 = u[:, 2 * W:3 * W]
    s22 = u[:, 3 * W:4 * W]
    s12 = u[:, 4 * W:5 * W]

    mu1_sq = mu1 * mu1
    mu2_sq = mu2 * mu2
    mu1_mu2 = mu1 * mu2
    sigma1_sq = s11 - mu1_sq
    sigma2_sq = s22 - mu2_sq
    sigma12 = s12 - mu1_mu2

    numer = (2.0 * mu1_mu2 + C1) * (2.0 * sigma12 + C2)
    denom = (mu1_sq + mu2_sq + C1) * (sigma1_sq + sigma2_sq + C2)
    # Cheap EUP reciprocal seed + one Newton step (~f32) instead of a divide.
    r = pl.reciprocal(denom, approx=True)
    r = r * (2.0 - denom * r)
    ssim_sum = jnp.sum(numer * r)

    ones = jnp.ones(l1_ref.shape, jnp.float32)
    l1_ref[...] = l1_sum * ones
    ssim_ref[...] = ssim_sum * ones


@functools.partial(jax.jit, static_argnames=("precision",))
def _dssim_l1_impl(pred, gt, *, precision):
    N, C, H, W = pred.shape
    A_np, B_np = _band_matrices(H, W)
    # Block-diagonal factors: vertical conv per channel, horizontal conv per map.
    a_blk = jnp.asarray(np.kron(np.eye(C, dtype=np.float32), A_np))          # (C*H, C*H)
    b_blk = jnp.asarray(np.kron(np.eye(NUM_MAPS, dtype=np.float32), B_np))   # (5*W, 5*W)

    kernel = functools.partial(_dssim_l1_kernel, precision=precision)
    l1_sums, ssim_sums = pl.pallas_call(
        kernel,
        out_shape=(jax.ShapeDtypeStruct((N, 1, 128), jnp.float32),
                   jax.ShapeDtypeStruct((N, 1, 128), jnp.float32)),
        grid_spec=pltpu.PrefetchScalarGridSpec(
            num_scalar_prefetch=0,
            grid=(N,),                       # one grid step per image, batch parallel
            in_specs=[
                pl.BlockSpec((C * H, C * H), lambda n: (0, 0)),
                pl.BlockSpec((NUM_MAPS * W, NUM_MAPS * W), lambda n: (0, 0)),
                pl.BlockSpec((1, C, H, W), lambda n: (n, 0, 0, 0)),
                pl.BlockSpec((1, C, H, W), lambda n: (n, 0, 0, 0)),
            ],
            out_specs=[
                pl.BlockSpec((1, 1, 128), lambda n: (n, 0, 0)),
                pl.BlockSpec((1, 1, 128), lambda n: (n, 0, 0)),
            ]),
        compiler_params=pltpu.CompilerParams(
            dimension_semantics=("parallel",),
            vmem_limit_bytes=32 * 1024 * 1024),
    )(a_blk, b_blk, pred, gt)

    l1_sum = l1_sums[:, 0, 0]                  # (N,)
    ssim_sum = ssim_sums[:, 0, 0]              # (N,)
    ssim_per_image = ssim_sum / (C * H * W)    # == pytorch_ssim.ssim(..., size_average=False)
    l1_mean = jnp.sum(l1_sum) / (N * C * H * W)

    # PyTorch: loss_map = 2|p-g| + (1 - ssim_per_image), where the (N,) ssim vector
    # broadcasts against the trailing W axis (well-defined for N == 1 or N == W).
    # Its global mean reduces exactly to:
    return l1_mean + jnp.mean(1.0 - ssim_per_image)


def dssim_l1_loss(pred, gt):
    return _dssim_l1_impl(pred, gt, precision=_matmul_precision())


def _reference(pred, gt):
    # Pure-JAX mirror of pytorch_ssim + the module's forward (N == 1 path).
    N, C, H, W = pred.shape
    win = jnp.tile(jnp.asarray(_WIN)[None, None], (C, 1, 1, 1))  # (C,1,11,11)

    def conv(x):
        return jax.lax.conv_general_dilated(
            x, win, window_strides=(1, 1), padding=[(PAD, PAD), (PAD, PAD)],
            dimension_numbers=("NCHW", "OIHW", "NCHW"), feature_group_count=C,
            precision=jax.lax.Precision.HIGHEST)

    mu1, mu2 = conv(pred), conv(gt)
    s11 = conv(pred * pred) - mu1 * mu1
    s22 = conv(gt * gt) - mu2 * mu2
    s12 = conv(pred * gt) - mu1 * mu2
    ssim_map = ((2 * mu1 * mu2 + C1) * (2 * s12 + C2)) / (
        (mu1 * mu1 + mu2 * mu2 + C1) * (s11 + s22 + C2))
    ssim_n = ssim_map.mean(axis=(1, 2, 3))
    loss_map = 2.0 * jnp.abs(pred - gt) + (1.0 - ssim_n)  # trailing-dim broadcast
    return loss_map.mean()


if __name__ == "__main__":
    key = jax.random.PRNGKey(0)
    k1, k2 = jax.random.split(key)
    # N=1 so the module's (N,C,H,W) + (N,) trailing-dim broadcast is well defined.
    N, C, H, W = 1, 3, 16, 16
    pred = jax.random.uniform(k1, (N, C, H, W), dtype=jnp.float32)
    gt = jax.random.uniform(k2, (N, C, H, W), dtype=jnp.float32)

    loss = dssim_l1_loss(pred, gt)
    jax.block_until_ready(loss)

    ref = _reference(pred, gt)
    # Tolerance covers bf16x3 (HIGH) MXU passes in the kernel vs HIGHEST reference.
    assert jnp.allclose(loss, ref, rtol=5e-3, atol=5e-4), (float(loss), float(ref))
    print("KERNEL_OK")
</pallas_src>

<mosaic_0001>
module attributes {stable_mosaic.version = 11 : i64} {
  func.func @_dssim_l1_kernel(%arg0: i32, %arg1: memref<48x48xf32, #tpu.memory_space<vmem>>, %arg2: memref<80x80xf32, #tpu.memory_space<vmem>>, %arg3: memref<1x3x16x16xf32, #tpu.memory_space<vmem>>, %arg4: memref<1x3x16x16xf32, #tpu.memory_space<vmem>>, %arg5: memref<1x1x128xf32, #tpu.memory_space<vmem>>, %arg6: memref<1x1x128xf32, #tpu.memory_space<vmem>>) attributes {dimension_semantics = [#tpu.dimension_semantics<parallel>], iteration_bounds = array<i64: 1>, scalar_prefetch = 0 : i64, scratch_operands = 0 : i64, tpu.core_type = #tpu.core_type<tc>, window_params = [{pipeline_mode = #tpu.pipeline_mode<synchronous>, transform_indices = @transform_0, window_bounds = array<i64: 48, 48>}, {pipeline_mode = #tpu.pipeline_mode<synchronous>, transform_indices = @transform_1, window_bounds = array<i64: 80, 80>}, {transform_indices = @transform_2, window_bounds = array<i64: 1, 3, 16, 16>}, {transform_indices = @transform_3, window_bounds = array<i64: 1, 3, 16, 16>}, {transform_indices = @transform_4, window_bounds = array<i64: 1, 1, 128>}, {transform_indices = @transform_5, window_bounds = array<i64: 1, 1, 128>}]} {
    %c0 = arith.constant 0 : index
    %c0_0 = arith.constant 0 : index
    %c0_1 = arith.constant 0 : index
    %c0_2 = arith.constant 0 : index
    %0 = vector.load %arg3[%c0, %c0_0, %c0_1, %c0_2] : memref<1x3x16x16xf32, #tpu.memory_space<vmem>>, vector<1x3x16x16xf32>
    %1 = vector.shape_cast %0 : vector<1x3x16x16xf32> to vector<48x16xf32>
    %c0_3 = arith.constant 0 : index
    %c0_4 = arith.constant 0 : index
    %c0_5 = arith.constant 0 : index
    %c0_6 = arith.constant 0 : index
    %2 = vector.load %arg4[%c0_3, %c0_4, %c0_5, %c0_6] : memref<1x3x16x16xf32, #tpu.memory_space<vmem>>, vector<1x3x16x16xf32>
    %3 = vector.shape_cast %2 : vector<1x3x16x16xf32> to vector<48x16xf32>
    %4 = arith.subf %1, %3 : vector<48x16xf32>
    %5 = math.absf %4 : vector<48x16xf32>
    %cst = arith.constant 2.000000e+00 : f32
    %6 = vector.broadcast %cst : f32 to vector<48x16xf32>
    %7 = arith.mulf %6, %5 : vector<48x16xf32>
    %8 = vector.shape_cast %7 : vector<48x16xf32> to vector<1x48x16xf32>
    %cst_7 = arith.constant dense<0.000000e+00> : vector<1xf32>
    %9 = vector.multi_reduction <add>, %8, %cst_7 [1, 2] : vector<1x48x16xf32> to vector<1xf32>
    %10 = vector.shape_cast %9 : vector<1xf32> to vector<1x1x1xf32>
    %11 = vector.extract %10[0, 0, 0] : f32 from vector<1x1x1xf32>
    %12 = arith.mulf %1, %1 : vector<48x16xf32>
    %13 = arith.mulf %3, %3 : vector<48x16xf32>
    %14 = arith.mulf %1, %3 : vector<48x16xf32>
    %15 = tpu.concatenate %1, %3, %12, %13, %14 in 1 : vector<48x16xf32>, vector<48x16xf32>, vector<48x16xf32>, vector<48x16xf32>, vector<48x16xf32> -> vector<48x80xf32>
    %c0_8 = arith.constant 0 : index
    %c0_9 = arith.constant 0 : index
    %16 = vector.load %arg1[%c0_8, %c0_9] : memref<48x48xf32, #tpu.memory_space<vmem>>, vector<48x48xf32>
    %cst_10 = arith.constant dense<0.000000e+00> : vector<48x80xf32>
    %17 = tpu.matmul %16, %15, %cst_10 {dimension_numbers = #tpu.dot_dimension_numbers<[1], [0], [0], [1], [0, 0, 1, 1], [], []>, precision = #tpu.contract_precision<fp32>} : vector<48x48xf32>, vector<48x80xf32>, vector<48x80xf32> -> vector<48x80xf32>
    %c0_11 = arith.constant 0 : index
    %c0_12 = arith.constant 0 : index
    %18 = vector.load %arg2[%c0_11, %c0_12] : memref<80x80xf32, #tpu.memory_space<vmem>>, vector<80x80xf32>
    %cst_13 = arith.constant dense<0.000000e+00> : vector<48x80xf32>
    %19 = tpu.matmul %17, %18, %cst_13 {dimension_numbers = #tpu.dot_dimension_numbers<[1], [0], [0], [1], [0, 0, 1, 1], [], []>, precision = #tpu.contract_precision<fp32>} : vector<48x80xf32>, vector<80x80xf32>, vector<48x80xf32> -> vector<48x80xf32>
    %20 = vector.extract_strided_slice %19 {offsets = [0, 0], sizes = [48, 16], strides = [1, 1]} : vector<48x80xf32> to vector<48x16xf32>
    %21 = vector.extract_strided_slice %19 {offsets = [0, 16], sizes = [48, 16], strides = [1, 1]} : vector<48x80xf32> to vector<48x16xf32>
    %22 = vector.extract_strided_slice %19 {offsets = [0, 32], sizes = [48, 16], strides = [1, 1]} : vector<48x80xf32> to vector<48x16xf32>
    %23 = vector.extract_strided_slice %19 {offsets = [0, 48], sizes = [48, 16], strides = [1, 1]} : vector<48x80xf32> to vector<48x16xf32>
    %24 = vector.extract_strided_slice %19 {offsets = [0, 64], sizes = [48, 16], strides = [1, 1]} : vector<48x80xf32> to vector<48x16xf32>
    %25 = arith.mulf %20, %20 : vector<48x16xf32>
    %26 = arith.mulf %21, %21 : vector<48x16xf32>
    %27 = arith.mulf %20, %21 : vector<48x16xf32>
    %28 = arith.subf %22, %25 : vector<48x16xf32>
    %29 = arith.subf %23, %26 : vector<48x16xf32>
    %30 = arith.subf %24, %27 : vector<48x16xf32>
    %cst_14 = arith.constant 2.000000e+00 : f32
    %31 = vector.broadcast %cst_14 : f32 to vector<48x16xf32>
    %32 = arith.mulf %31, %27 : vector<48x16xf32>
    %cst_15 = arith.constant 9.99999974E-5 : f32
    %33 = vector.broadcast %cst_15 : f32 to vector<48x16xf32>
    %34 = arith.addf %32, %33 : vector<48x16xf32>
    %cst_16 = arith.constant 2.000000e+00 : f32
    %35 = vector.broadcast %cst_16 : f32 to vector<48x16xf32>
    %36 = arith.mulf %35, %30 : vector<48x16xf32>
    %cst_17 = arith.constant 8.99999984E-4 : f32
    %37 = vector.broadcast %cst_17 : f32 to vector<48x16xf32>
    %38 = arith.addf %36, %37 : vector<48x16xf32>
    %39 = arith.mulf %34, %38 : vector<48x16xf32>
    %40 = arith.addf %25, %26 : vector<48x16xf32>
    %cst_18 = arith.constant 9.99999974E-5 : f32
    %41 = vector.broadcast %cst_18 : f32 to vector<48x16xf32>
    %42 = arith.addf %40, %41 : vector<48x16xf32>
    %43 = arith.addf %28, %29 : vector<48x16xf32>
    %cst_19 = arith.constant 8.99999984E-4 : f32
    %44 = vector.broadcast %cst_19 : f32 to vector<48x16xf32>
    %45 = arith.addf %43, %44 : vector<48x16xf32>
    %46 = arith.mulf %42, %45 : vector<48x16xf32>
    %47 = tpu.reciprocal %46 {approx = true} : vector<48x16xf32> -> vector<48x16xf32>
    %48 = arith.mulf %46, %47 : vector<48x16xf32>
    %cst_20 = arith.constant 2.000000e+00 : f32
    %49 = vector.broadcast %cst_20 : f32 to vector<48x16xf32>
    %50 = arith.subf %49, %48 : vector<48x16xf32>
    %51 = arith.mulf %47, %50 : vector<48x16xf32>
    %52 = arith.mulf %39, %51 : vector<48x16xf32>
    %53 = vector.shape_cast %52 : vector<48x16xf32> to vector<1x48x16xf32>
    %cst_21 = arith.constant dense<0.000000e+00> : vector<1xf32>
    %54 = vector.multi_reduction <add>, %53, %cst_21 [1, 2] : vector<1x48x16xf32> to vector<1xf32>
    %55 = vector.shape_cast %54 : vector<1xf32> to vector<1x1x1xf32>
    %56 = vector.extract %55[0, 0, 0] : f32 from vector<1x1x1xf32>
    %cst_22 = arith.constant 1.000000e+00 : f32
    %57 = vector.broadcast %cst_22 : f32 to vector<1x1x128xf32>
    %58 = vector.broadcast %11 : f32 to vector<1x1x128xf32>
    %59 = arith.mulf %58, %57 : vector<1x1x128xf32>
    %c0_23 = arith.constant 0 : index
    %c0_24 = arith.constant 0 : index
    %c0_25 = arith.constant 0 : index
    %60 = vector.load %arg5[%c0_23, %c0_24, %c0_25] : memref<1x1x128xf32, #tpu.memory_space<vmem>>, vector<1x1x128xf32>
    tpu.vector_store %arg5[%c0_23, %c0_24, %c0_25], %59 {strides = array<i32>} : memref<1x1x128xf32, #tpu.memory_space<vmem>>, vector<1x1x128xf32>,
    %61 = vector.broadcast %56 : f32 to vector<1x1x128xf32>
    %62 = arith.mulf %61, %57 : vector<1x1x128xf32>
    %c0_26 = arith.constant 0 : index
    %c0_27 = arith.constant 0 : index
    %c0_28 = arith.constant 0 : index
    %63 = vector.load %arg6[%c0_26, %c0_27, %c0_28] : memref<1x1x128xf32, #tpu.memory_space<vmem>>, vector<1x1x128xf32>
    tpu.vector_store %arg6[%c0_26, %c0_27, %c0_28], %62 {strides = array<i32>} : memref<1x1x128xf32, #tpu.memory_space<vmem>>, vector<1x1x128xf32>,
    return
  }
  func.func @transform_0(%arg0: i32) -> (i32, i32) {
    %c0_i32 = arith.constant 0 : i32
    %c0_i32_0 = arith.constant 0 : i32
    %c0_i32_1 = arith.constant 0 : i32
    return %c0_i32, %c0_i32_0 : i32, i32
  }
  func.func @transform_1(%arg0: i32) -> (i32, i32) {
    %c0_i32 = arith.constant 0 : i32
    %c0_i32_0 = arith.constant 0 : i32
    %c0_i32_1 = arith.constant 0 : i32
    return %c0_i32, %c0_i32_0 : i32, i32
  }
  func.func @transform_2(%arg0: i32) -> (i32, i32, i32, i32) {
    %c0_i32 = arith.constant 0 : i32
    %c0_i32_0 = arith.constant 0 : i32
    %c0_i32_1 = arith.constant 0 : i32
    %c0_i32_2 = arith.constant 0 : i32
    return %arg0, %c0_i32, %c0_i32_0, %c0_i32_1 : i32, i32, i32, i32
  }
  func.func @transform_3(%arg0: i32) -> (i32, i32, i32, i32) {
    %c0_i32 = arith.constant 0 : i32
    %c0_i32_0 = arith.constant 0 : i32
    %c0_i32_1 = arith.constant 0 : i32
    %c0_i32_2 = arith.constant 0 : i32
    return %arg0, %c0_i32, %c0_i32_0, %c0_i32_1 : i32, i32, i32, i32
  }
  func.func @transform_4(%arg0: i32) -> (i32, i32, i32) {
    %c0_i32 = arith.constant 0 : i32
    %c0_i32_0 = arith.constant 0 : i32
    %c0_i32_1 = arith.constant 0 : i32
    return %arg0, %c0_i32, %c0_i32_0 : i32, i32, i32
  }
  func.func @transform_5(%arg0: i32) -> (i32, i32, i32) {
    %c0_i32 = arith.constant 0 : i32
    %c0_i32_0 = arith.constant 0 : i32
    %c0_i32_1 = arith.constant 0 : i32
    return %arg0, %c0_i32, %c0_i32_0 : i32, i32, i32
  }
}

</mosaic_0001>

<bundles_post_ra>
// kernel: _dssim_l1_impl.1
= control target key start
LH: loop header
LB: loop body
LE: loop exit
PB: predicated region body
PF: predicated region fallthrough
CT: control target
= control target key end

     0   :  { %11 = vsyncpa [#allocation3], 0  ;;  %s3709_s0 = inlined_call_operand.hbm [shape: f32[48,48], index: 0, kind: input, shape index: {}]   ;;  %s3710_s1 = inlined_call_operand.hbm [shape: f32[80,80], index: 1, kind: input, shape index: {}]   ;;  %s3711_s2 = inlined_call_operand.hbm [shape: f32[1,3,16,16], index: 2, kind: input, shape index: {}]   ;;  %s3712_s3 = inlined_call_operand.hbm [shape: f32[1,3,16,16], index: 3, kind: input, shape index: {}]   ;;  %s3713_s4 = inlined_call_operand.vmem [shape: f32[1,1,128], index: 4, kind: output, shape index: {0}]   ;;  %s3714_s5 = inlined_call_operand.vmem [shape: f32[1,1,128], index: 5, kind: output, shape index: {1}]  }
   0x1   :  { %12 = vsyncpa [#allocation5], 0 }
   0x2   :  { %13 = vsyncpa [#allocation8], 0  ;;  %s2988_s18 = smov [#allocation4]   ;;  %s2989_s20 = smov [#allocation2]  }
   0x3   :  { %s31_s19 = sshll.u32 %s2988_s18, 4  ;;  %s19_s21 = sshll.u32 %s2989_s20, 4  ;;  %s32_s19 = int_to_ptr.vmem [resolvable:$true] %s31_s19  ;;  %s3030_s21 = int_to_ptr.vmem [resolvable:$true] %s19_s21 }
   0x4   :  { %s2894_s24 = scalar_lea.hbm %s3710_s1, 1280 }
   0x5   :  { %p2895_p0 = scmp.ne.s32.totalorder %s3710_s1, %s2894_s24  ;;  %p2898_p1 = scmp.lt.u32.totalorder %s2894_s24, %s3710_s1 }
   0x7   :  { %p2900_p2 = pnand %p2898_p1, %p2895_p0 }
   0x9   :  { %2903 = shalt.err (!%p2900_p2)
}
   0xa   :  { %s2904_s29 = scalar_lea.vmem %s32_s19, 1280  ;;  %p2909_p4 = scmp.lt.s32.totalorder %s32_s19, %s32_s19 }
   0xb   :  { %p2905_p3 = scmp.ne.s32.totalorder %s32_s19, %s2904_s29  ;;  %p2910_p5 = scmp.lt.s32.totalorder %s2904_s29, %s2904_s29 }
   0xd   :  { %p2911_p6 = por %p2910_p5, %p2909_p4 }
   0xf   :  { %p2912_p7 = pnand %p2911_p6, %p2905_p3 }
  0x11   :  { %2915 = shalt.err (!%p2912_p7)
}
  0x12   :  { %s2990_s30 = smov 128   ;;  %s2991_s6 = smov 8  }
  0x13   :  { %37 = dma.hbm_to_vmem [thread:$0]  %s3710_s1, 1280, %s32_s19, [#allocation5], %s2990_s30, %s2990_s30, %s2991_s6  }
  0x14   :  { %s2916_s11 = scalar_lea.hbm %s3709_s0, 768 }
  0x15   :  { %p2917_p8 = scmp.ne.s32.totalorder %s3709_s0, %s2916_s11  ;;  %p2920_p9 = scmp.lt.u32.totalorder %s2916_s11, %s3709_s0 }
  0x17   :  { %p2922_p10 = pnand %p2920_p9, %p2917_p8 }
  0x19   :  { %2925 = shalt.err (!%p2922_p10)
}
  0x1a   :  { %s2926_s16 = scalar_lea.vmem %s3030_s21, 768  ;;  %p2931_p12 = scmp.lt.s32.totalorder %s3030_s21, %s3030_s21 }
  0x1b   :  { %p2927_p11 = scmp.ne.s32.totalorder %s3030_s21, %s2926_s16  ;;  %p2932_p13 = scmp.lt.s32.totalorder %s2926_s16, %s2926_s16 }
  0x1d   :  { %p2933_p0 = por %p2932_p13, %p2931_p12 }
  0x1f   :  { %p2934_p1 = pnand %p2933_p0, %p2927_p11 }
  0x21   :  { %2937 = shalt.err (!%p2934_p1)
}
  0x22   :  { %25 = dma.hbm_to_vmem [thread:$0]  %s3709_s0, 768, %s3030_s21, [#allocation3], %s2990_s30, %s2990_s30, %s2991_s6  }
  0x23   :  { %s2992_s18 = smov [#allocation6]   ;;  %s2993_s20 = smov [#allocation7]  }
  0x24   :  { %s43_s19 = sshll.u32 %s2992_s18, 4  ;;  %s55_s22 = sshll.u32 %s2993_s20, 4  ;;  %s44_s19 = int_to_ptr.vmem [resolvable:$true] %s43_s19  ;;  %s3067_s22 = int_to_ptr.vmem [resolvable:$true] %s55_s22 }
  0x25   :  { %s2938_s25 = scalar_lea.hbm %s3711_s2, 768 }
  0x26   :  { %p2939_p2 = scmp.ne.s32.totalorder %s3711_s2, %s2938_s25  ;;  %p2942_p3 = scmp.lt.u32.totalorder %s2938_s25, %s3711_s2 }
  0x28   :  { %p2944_p4 = pnand %p2942_p3, %p2939_p2 }
  0x2a   :  { %2947 = shalt.err (!%p2944_p4)
}
  0x2b   :  { %s2948_s0 = scalar_lea.vmem %s44_s19, 768  ;;  %p2953_p6 = scmp.lt.s32.totalorder %s44_s19, %s44_s19 }
  0x2c   :  { %p2949_p5 = scmp.ne.s32.totalorder %s44_s19, %s2948_s0  ;;  %p2954_p7 = scmp.lt.s32.totalorder %s2948_s0, %s2948_s0 }
  0x2e   :  { %p2955_p8 = por %p2954_p7, %p2953_p6 }
  0x30   :  { %p2956_p9 = pnand %p2955_p8, %p2949_p5 }
  0x32   :  { %2959 = shalt.err (!%p2956_p9)
}
  0x33   :  { %49 = dma.hbm_to_vmem [thread:$0]  %s3711_s2, 768, %s44_s19, [#allocation5], %s2990_s30, %s2990_s30, %s2991_s6  }
  0x34   :  { %s2960_s10 = scalar_lea.hbm %s3712_s3, 768 }
  0x35   :  { %p2961_p10 = scmp.ne.s32.totalorder %s3712_s3, %s2960_s10  ;;  %p2964_p11 = scmp.lt.u32.totalorder %s2960_s10, %s3712_s3 }
  0x37   :  { %p2966_p12 = pnand %p2964_p11, %p2961_p10 }
  0x39   :  { %2969 = shalt.err (!%p2966_p12)
}
  0x3a   :  { %s2970_s15 = scalar_lea.vmem %s3067_s22, 768  ;;  %p2975_p0 = scmp.lt.s32.totalorder %s3067_s22, %s3067_s22 }
  0x3b   :  { %p2971_p13 = scmp.ne.s32.totalorder %s3067_s22, %s2970_s15  ;;  %p2976_p1 = scmp.lt.s32.totalorder %s2970_s15, %s2970_s15 }
  0x3d   :  { %p2977_p2 = por %p2976_p1, %p2975_p0 }
  0x3f   :  { %p2978_p3 = pnand %p2977_p2, %p2971_p13 }
  0x41   :  { %2981 = shalt.err (!%p2978_p3)
}
  0x42   :  { %61 = dma.hbm_to_vmem [thread:$0]  %s3712_s3, 768, %s3067_s22, [#allocation8], %s2990_s30, %s2990_s30, %s2991_s6  }
  0x43   :  { %2982 = dma.done.wait [#allocation3], 768  }
  0x44   :  { %2983 = vsyncadd [#allocation3], 4294966528 }
  0x45   :  { %2984 = dma.done.wait [#allocation5], 2048  }
  0x46   :  { %2985 = vsyncadd [#allocation5], 4294965248 }
  0x47   :  { %2986 = dma.done.wait [#allocation8], 768  }
  0x48   :  { %2987 = vsyncadd [#allocation8], 4294966528  ;;  %v80_v0 = vld [vmem:[#allocation7] sm:$0xff]  ;;  %v3104_v1 = vld [vmem:[#allocation6] sm:$0xff]  ;;  %s2994_s1 = smov 16   ;;  %s2995_s17 = smov 32  }
  0x49   :  { %149 = vrot.lane.b32.xlu0 %v80_v0, %s2994_s1  ;;  %v125_v2 = vmul.f32 %v3104_v1, %v3104_v1  ;;  %v3109_v3 = vld [vmem:[#allocation6 + $0x8] sm:$0xff]  ;;  %v81_v4 = vld [vmem:[#allocation7 + $0x8] sm:$0xff]  ;;  %v131_v6 = vmul.f32 %v80_v0, %v80_v0  ;;  %s2996_s3 = smov 48   ;;  %v137_v8 = vmul.f32 %v80_v0, %v3104_v1  ;;  %s2997_s30 = smov 64   ;;  %v3121_v10 = vld [vmem:[#allocation6 + $0x10] sm:$0xff]  ;;  %vm252_vm0 = vcmask 392192  }
  0x4a   :  { %v126_v5 = vmul.f32 %v3109_v3, %v3109_v3  ;;  %v132_v7 = vmul.f32 %v81_v4, %v81_v4  ;;  %v138_v9 = vmul.f32 %v81_v4, %v3109_v3  ;;  %v82_v11 = vld [vmem:[#allocation7 + $0x10] sm:$0xff]  ;;  %v3124_v12 = vld [vmem:[#allocation6 + $0x18] sm:$0xff]  ;;  %v83_v13 = vld [vmem:[#allocation7 + $0x18] sm:$0xff]  ;;  %v127_v14 = vmul.f32 %v3121_v10, %v3121_v10  ;;  %s2998_s6 = smov 112   ;;  %s2999_s18 = smov 96  }
  0x4b   :  { %173 = vrot.lane.b32.xlu1 %v125_v2, %s2995_s17  ;;  %v128_v15 = vmul.f32 %v3124_v12, %v3124_v12  ;;  %v133_v16 = vmul.f32 %v82_v11, %v82_v11  ;;  %v134_v17 = vmul.f32 %v83_v13, %v83_v13  ;;  %v139_v18 = vmul.f32 %v82_v11, %v3121_v10  ;;  %v84_v20 = vld [vmem:[#allocation7 + $0x20] sm:$0xff]  ;;  %v3139_v21 = vld [vmem:[#allocation6 + $0x20] sm:$0xff]  ;;  %v85_v24 = vld [vmem:[#allocation7 + $0x28] sm:$0xff] }
  0x4c   :  { %v140_v19 = vmul.f32 %v83_v13, %v3124_v12  ;;  %v266_v22 = vld [vmem:[#allocation2] sm:$0xff]  ;;  %v3143_v25 = vld [vmem:[#allocation6 + $0x28] sm:$0xff]  ;;  %v129_v27 = vmul.f32 %v3139_v21, %v3139_v21  ;;  %v135_v31 = vmul.f32 %v84_v20, %v84_v20  ;;  %v136_v33 = vmul.f32 %v85_v24, %v85_v24  ;;  %v1016_v37 = vld [vmem:[#allocation4] sm:$0xff] }
  0x4d   :  { %151 = vrot.lane.b32.xlu0 %v81_v4, %s2994_s1  ;;  %v273_v23 = vsel %vm252_vm0, %v266_v22, 0  ;;  %v130_v29 = vmul.f32 %v3143_v25, %v3143_v25  ;;  %v141_v35 = vmul.f32 %v84_v20, %v3139_v21  ;;  %v142_v36 = vmul.f32 %v85_v24, %v3143_v25  ;;  %v1017_v38 = vld [vmem:[#allocation4 + $0x8] sm:$0xff]  ;;  %v1018_v39 = vld [vmem:[#allocation4 + $0x10] sm:$0xff]  ;;  %v1019_v42 = vld [vmem:[#allocation4 + $0x18] sm:$0xff] }
  0x4e   :  { %v3145_v26 = vand.u32 4294901760, %v273_v23  ;;  %v1046_v40 = vand.u32 4294901760, %v1016_v37  ;;  %v1049_v41 = vand.u32 4294901760, %v1017_v38  ;;  %v1052_v43 = vand.u32 4294901760, %v1018_v39  ;;  %v1020_v44 = vld [vmem:[#allocation4 + $0x20] sm:$0xff]  ;;  %v1021_v45 = vld [vmem:[#allocation4 + $0x28] sm:$0xff] }
  0x4f   :  { %175 = vrot.lane.b32.xlu1 %v126_v5, %s2995_s17  ;;  %v1055_v46 = vand.u32 4294901760, %v1019_v42  ;;  %v1058_v47 = vand.u32 4294901760, %v1020_v44  ;;  %v1061_v48 = vand.u32 4294901760, %v1021_v45  ;;  %v1022_v58 = vld [vmem:[#allocation4 + $0x30] sm:$0xff]  ;;  %v1023_v62 = vld [vmem:[#allocation4 + $0x38] sm:$0xff]  ;;  %vm104_vm1 = vcmask 130048  }
  0x50   :  { %v3151_v28 = vsub.f32 %v273_v23, %v3145_v26  ;;  %v3168_v49 = vpack.c.bf16 %v1049_v41, %v1046_v40  ;;  %v3170_v50 = vsub.f32 %v1016_v37, %v1046_v40  ;;  %v3172_v51 = vsub.f32 %v1017_v38, %v1049_v41 }
  0x51   :  { %197 = vrot.lane.b32.xlu0 %v131_v6, %s2996_s3  ;;  %v3174_v52 = vsub.f32 %v1018_v39, %v1052_v43  ;;  %v3176_v54 = vpack.c.bf16 %v1055_v46, %v1052_v43  ;;  %v3178_v55 = vsub.f32 %v1019_v42, %v1055_v46  ;;  %v3180_v56 = vpack.c.bf16 %v1061_v48, %v1058_v47 }
  0x52   :  { %v363_v30 = vand.u32 4294901760, %v3151_v28  ;;  %v3182_v57 = vsub.f32 %v1020_v44, %v1058_v47  ;;  %v1183_v59 = vand.u32 4294901760, %v3170_v50  ;;  %v1190_v60 = vand.u32 4294901760, %v3172_v51 }
  0x53   :  { %199 = vrot.lane.b32.xlu1 %v132_v7, %s2996_s3  ;;  %v3720_v61 = vand.u32 4294901760, %v3174_v52  ;;  %v3719_v0 = vand.u32 4294901760, %v3178_v55  ;;  %v3189_v4 = vsub.f32 %v1021_v45, %v1061_v48  ;;  %vm245_vm2 = vcmask 261120  }
  0x54   :  { %v364_v32 = vsub.f32 %v3151_v28, %v363_v30  ;;  %v3718_v2 = vand.u32 4294901760, %v3182_v57  ;;  %v1184_v5 = vsub.f32 %v3170_v50, %v1183_v59  ;;  %v1191_v6 = vsub.f32 %v3172_v51, %v1190_v60 }
  0x55   :  { %221 = vrot.lane.b32.xlu0 %v137_v8, %s2997_s30  ;;  %v1198_v7 = vsub.f32 %v3174_v52, %v3720_v61  ;;  %v1064_v8 = vand.u32 4294901760, %v1022_v58  ;;  %vm259_vm3 = vcmask 523264   ;;  %vm1026_vm4 = vcmask 654336  }
  0x56   :  { %v365_v34 = vand.u32 4294901760, %v364_v32 }
  0x57   :  { %223 = vrot.lane.b32.xlu1 %v138_v9, %s2997_s30 }
  0x58   :  { %2314 = vmatprep.mubr.f32.mxu0 %v365_v34 }
  0x59   :  { %153 = vrot.lane.b32.xlu0 %v82_v11, %s2994_s1  ;;  %v1205_v11 = vsub.f32 %v3178_v55, %v3719_v0 }
  0x5b   :  { %155 = vrot.lane.b32.xlu1 %v83_v13, %s2994_s1  ;;  %v1212_v13 = vsub.f32 %v3182_v57, %v3718_v2 }
  0x5d   :  { %177 = vrot.lane.b32.xlu0 %v127_v14, %s2995_s17  ;;  %v3717_v14 = vand.u32 4294901760, %v3189_v4 }
  0x5f   :  { %179 = vrot.lane.b32.xlu1 %v128_v15, %s2995_s17  ;;  %v1067_v15 = vand.u32 4294901760, %v1023_v62  ;;  %v1219_v22 = vsub.f32 %v3189_v4, %v3717_v14 }
  0x61   :  { %201 = vrot.lane.b32.xlu0 %v133_v16, %s2996_s3  ;;  %v1185_v16 = vand.u32 4294901760, %v1184_v5  ;;  %v3210_v23 = vpack.c.bf16 %v1067_v15, %v1064_v8 }
  0x63   :  { %203 = vrot.lane.b32.xlu1 %v134_v17, %s2996_s3  ;;  %v1192_v17 = vand.u32 4294901760, %v1191_v6 }
  0x65   :  { %225 = vrot.lane.b32.xlu0 %v139_v18, %s2997_s30  ;;  %v1199_v18 = vand.u32 4294901760, %v1198_v7 }
  0x67   :  { %227 = vrot.lane.b32.xlu1 %v140_v19, %s2997_s30 }
  0x69   :  { %157 = vrot.lane.b32.xlu0 %v84_v20, %s2994_s1  ;;  %v1206_v20 = vand.u32 4294901760, %v1205_v11 }
  0x6b   :  { %159 = vrot.lane.b32.xlu1 %v85_v24, %s2994_s1  ;;  %v2694_v24 = vpack.c.bf16 %v1192_v17, %v1185_v16  ;;  %v2698_v34 = vpack.c.bf16 %v1206_v20, %v1199_v18 }
  0x6d   :  { %181 = vrot.lane.b32.xlu0 %v129_v27, %s2995_s17  ;;  %v1213_v27 = vand.u32 4294901760, %v1212_v13  ;;  %2695 = vmatprep.subr.bf16.mxu1 %v2694_v24 }
  0x6e   :  { %2697 = vmatpush3.bf16.msra.mxu1 %v2694_v24 }
  0x6f   :  { %183 = vrot.lane.b32.xlu1 %v130_v29, %s2995_s17  ;;  %v3212_v29 = vsub.f32 %v1022_v58, %v1064_v8  ;;  %2699 = vmatprep.subr.bf16.mxu1 %v2698_v34 }
  0x71   :  { %205 = vrot.lane.b32.xlu0 %v135_v31, %s2996_s3  ;;  %v3214_v31 = vsub.f32 %v1023_v62, %v1067_v15 }
  0x72   :  { %2701 = vmatpush3.bf16.msra.mxu1 %v2698_v34 }
  0x73   :  { %207 = vrot.lane.b32.xlu1 %v136_v33, %s2996_s3  ;;  %v3715_v37 = vand.u32 4294901760, %v3214_v31 }
  0x75   :  { %229 = vrot.lane.b32.xlu0 %v141_v35, %s2997_s30  ;;  %v1220_v35 = vand.u32 4294901760, %v1219_v22  ;;  %v1233_v42 = vsub.f32 %v3214_v31, %v3715_v37  ;;  %v267_v22 = vld [vmem:[#allocation2 + $0x8] sm:$0xff] }
  0x77   :  { %231 = vrot.lane.b32.xlu1 %v142_v36, %s2997_s30  ;;  %v3716_v36 = vand.u32 4294901760, %v3212_v29  ;;  %v2702_v41 = vpack.c.bf16 %v1220_v35, %v1213_v27  ;;  %v1234_v47 = vand.u32 4294901760, %v1233_v42  ;;  %v276_v35 = vsel %vm252_vm0, %v267_v22, 0 }
  0x79   :  { %2703 = vmatprep.subr.bf16.mxu1 %v2702_v41 }
  0x7a   :  { %2705 = vmatpush3.bf16.msra.mxu1 %v2702_v41  ;;  %v269_v41 = vld [vmem:[#allocation2 + $0x18] sm:$0xff] }
  0xbb   :  { %v150_v53 = vpop.permute.xlu0 %149 }
  0xbc   :  { %v239_v32 = vsel %vm104_vm1, %v3104_v1, %v150_v53  ;;  %v1226_v1 = vsub.f32 %v3212_v29, %v3716_v36 }
  0xbd   :  { %v174_v63 = vpop.permute.xlu1 %173 }
  0xbe   :  { %v246_v40 = vsel %vm245_vm2, %v239_v32, %v174_v63  ;;  %v1227_v46 = vand.u32 4294901760, %v1226_v1  ;;  %v268_v32 = vld [vmem:[#allocation2 + $0x10] sm:$0xff] }
  0xbf   :  { %v152_v9 = vpop.permute.xlu0 %151 }
  0xc0   :  { %v240_v38 = vsel %vm104_vm1, %v3109_v3, %v152_v9  ;;  %v2706_v62 = vpack.c.bf16 %v1234_v47, %v1227_v46 }
  0xc1   :  { %v176_v19 = vpop.permute.xlu1 %175 }
  0xc2   :  { %v247_v3 = vsel %vm245_vm2, %v240_v38, %v176_v19  ;;  %2707 = vmatprep.subr.bf16.mxu1 %v2706_v62 }
  0xc3   :  { %v198_v33 = vpop.permute.xlu0 %197  ;;  %2709 = vmatpush3.bf16.msra.mxu1 %v2706_v62  ;;  %v271_v62 = vld [vmem:[#allocation2 + $0x28] sm:$0xff] }
  0xc4   :  { %v253_v43 = vsel %vm252_vm0, %v246_v40, %v198_v33 }
  0xc5   :  { %v200_v39 = vpop.permute.xlu1 %199 }
  0xc6   :  { %v254_v48 = vsel %vm252_vm0, %v247_v3, %v200_v39  ;;  %v270_v3 = vld [vmem:[#allocation2 + $0x20] sm:$0xff] }
  0xc7   :  { %v222_v44 = vpop.permute.xlu0 %221 }
  0xc8   :  { %v260_v45 = vsel %vm259_vm3, %v253_v43, %v222_v44  ;;  %v3252_v43 = vand.u32 4294901760, %v276_v35 }
  0xc9   :  { %v224_v53 = vpop.permute.xlu1 %223  ;;  %v291_v63 = vand.u32 4294901760, %v260_v45 }
  0xca   :  { %v261_v58 = vsel %vm259_vm3, %v254_v48, %v224_v53  ;;  %v282_v48 = vsel %vm252_vm0, %v269_v41, 0 }
  0xcb   :  { %v294_v5 = vand.u32 4294901760, %v261_v58  ;;  %v154_v6 = vpop.permute.xlu0 %153  ;;  %v3260_v53 = vsub.f32 %v260_v45, %v291_v63 }
  0xcc   :  { %v241_v13 = vsel %vm104_vm1, %v3121_v10, %v154_v6 }
  0xcd   :  { %v3234_v7 = vpack.c.bf16 %v294_v5, %v291_v63  ;;  %v156_v8 = vpop.permute.xlu1 %155  ;;  %v3256_v46 = vsub.f32 %v261_v58, %v294_v5  ;;  %v3270_v58 = vand.u32 4294901760, %v282_v48 }
  0xce   :  { %v242_v18 = vsel %vm104_vm1, %v3124_v12, %v156_v8  ;;  %v279_v12 = vsel %vm252_vm0, %v268_v32, 0  ;;  %v3264_v8 = vsub.f32 %v276_v35, %v3252_v43 }
  0xcf   :  { %v178_v9 = vpop.permute.xlu0 %177  ;;  %2603 = vmatprep.subr.bf16.mxu0 %v3234_v7  ;;  %v3254_v44 = vand.u32 4294901760, %v279_v12  ;;  %v431_v5 = vand.u32 4294901760, %v3256_v46  ;;  %v3287_v32 = vsub.f32 %v282_v48, %v3270_v58 }
  0xd0   :  { %2605 = vmatpush3.bf16.msra.mxu0 %v3234_v7  ;;  %v248_v17 = vsel %vm245_vm2, %v241_v13, %v178_v9  ;;  %v285_v9 = vsel %vm252_vm0, %v270_v3, 0 }
  0xd1   :  { %v180_v11 = vpop.permute.xlu1 %179  ;;  %v432_v35 = vsub.f32 %v3256_v46, %v431_v5 }
  0xd2   :  { %v249_v24 = vsel %vm245_vm2, %v242_v18, %v180_v11  ;;  %v3268_v11 = vsub.f32 %v279_v12, %v3254_v44 }
  0xd3   :  { %v202_v15 = vpop.permute.xlu0 %201 }
  0xd4   :  { %v255_v19 = vsel %vm252_vm0, %v248_v17, %v202_v15  ;;  %v288_v15 = vsel %vm252_vm0, %v271_v62, 0  ;;  %v3279_v17 = vand.u32 4294901760, %v285_v9  ;;  %v393_v62 = vand.u32 4294901760, %v3287_v32 }
  0xd5   :  { %v204_v16 = vpop.permute.xlu1 %203 }
  0xd6   :  { %v256_v33 = vsel %vm252_vm0, %v249_v24, %v204_v16  ;;  %v424_v16 = vand.u32 4294901760, %v3260_v53  ;;  %v383_v24 = vand.u32 4294901760, %v3268_v11  ;;  %v3304_v12 = vsub.f32 %v285_v9, %v3279_v17 }
  0xd7   :  { %v226_v20 = vpop.permute.xlu0 %225 }
  0xd8   :  { %v262_v27 = vsel %vm259_vm3, %v255_v19, %v226_v20  ;;  %v373_v20 = vand.u32 4294901760, %v3264_v8 }
  0xd9   :  { %v228_v34 = vpop.permute.xlu1 %227  ;;  %v297_v38 = vand.u32 4294901760, %v262_v27 }
  0xda   :  { %v263_v10 = vsel %vm259_vm3, %v256_v33, %v228_v34  ;;  %v374_v48 = vsub.f32 %v3264_v8, %v373_v20 }
  0xdb   :  { %v300_v39 = vand.u32 4294901760, %v263_v10  ;;  %v158_v40 = vpop.permute.xlu0 %157  ;;  %v3281_v18 = vsub.f32 %v262_v27, %v297_v38 }
  0xdc   :  { %v243_v45 = vsel %vm104_vm1, %v3139_v21, %v158_v40  ;;  %v3289_v21 = vand.u32 4294901760, %v288_v15  ;;  %v425_v40 = vsub.f32 %v3260_v53, %v424_v16 }
  0xdd   :  { %v3250_v1 = vpack.c.bf16 %v300_v39, %v297_v38  ;;  %v160_v42 = vpop.permute.xlu1 %159  ;;  %v3273_v13 = vsub.f32 %v263_v10, %v300_v39 }
  0xde   :  { %v244_v34 = vsel %vm104_vm1, %v3143_v25, %v160_v42  ;;  %v438_v25 = vand.u32 4294901760, %v3281_v18 }
  0xdf   :  { %v182_v47 = vpop.permute.xlu0 %181  ;;  %2607 = vmatprep.subr.bf16.mxu0 %v3250_v1  ;;  %v445_v33 = vand.u32 4294901760, %v3273_v13 }
  0xe0   :  { %2609 = vmatpush3.bf16.msra.mxu0 %v3250_v1  ;;  %v250_v22 = vsel %vm245_vm2, %v243_v45, %v182_v47 }
  0xe1   :  { %v184_v6 = vpop.permute.xlu1 %183 }
  0xe2   :  { %v251_v38 = vsel %vm245_vm2, %v244_v34, %v184_v6  ;;  %v3314_v6 = vsub.f32 %v288_v15, %v3289_v21  ;;  %v384_v34 = vsub.f32 %v3268_v11, %v383_v24 }
  0xe3   :  { %v206_v63 = vpop.permute.xlu0 %205 }
  0xe4   :  { %v257_v27 = vsel %vm252_vm0, %v250_v22, %v206_v63  ;;  %v433_v63 = vand.u32 4294901760, %v432_v35  ;;  %v426_v22 = vand.u32 4294901760, %v425_v40  ;;  %v439_v35 = vsub.f32 %v3281_v18, %v438_v25 }
  0xe5   :  { %v208_v19 = vpop.permute.xlu1 %207  ;;  %v394_v40 = vsub.f32 %v3287_v32, %v393_v62 }
  0xe6   :  { %v258_v41 = vsel %vm252_vm0, %v251_v38, %v208_v19  ;;  %v446_v19 = vsub.f32 %v3273_v13, %v445_v33 }
  0xe7   :  { %v230_v10 = vpop.permute.xlu0 %229 }
  0xe8   :  { %v264_v39 = vsel %vm259_vm3, %v257_v27, %v230_v10  ;;  %v403_v27 = vand.u32 4294901760, %v3304_v12  ;;  %v447_v37 = vand.u32 4294901760, %v446_v19 }
  0xe9   :  { %v303_v42 = vand.u32 4294901760, %v264_v39  ;;  %v232_v3 = vpop.permute.xlu1 %231 }
  0xea   :  { %v265_v47 = vsel %vm259_vm3, %v258_v41, %v232_v3  ;;  %v2614_v3 = vpack.c.bf16 %v433_v63, %v426_v22  ;;  %v395_v22 = vand.u32 4294901760, %v394_v40 }
  0xeb   :  { %v3316_v45 = vsub.f32 %v264_v39, %v303_v42  ;;  %v306_v9 = vand.u32 4294901760, %v265_v47  ;;  %v375_v39 = vand.u32 4294901760, %v374_v48  ;;  %v440_v48 = vand.u32 4294901760, %v439_v35 }
  0xed   :  { %v452_v10 = vand.u32 4294901760, %v3316_v45  ;;  %v3326_v38 = vpack.c.bf16 %v306_v9, %v303_v42  ;;  %v3328_v15 = vsub.f32 %v265_v47, %v306_v9  ;;  %v413_v42 = vand.u32 4294901760, %v3314_v6 }
  0xee   :  { %v385_v47 = vand.u32 4294901760, %v384_v34  ;;  %v404_v9 = vsub.f32 %v3304_v12, %v403_v27  ;;  %v2618_v19 = vpack.c.bf16 %v447_v37, %v440_v48  ;;  %v2626_v37 = vpack.c.bf16 %v3256_v46, %v3260_v53 }
  0xef   :  { %v459_v41 = vand.u32 4294901760, %v3328_v15  ;;  %2611 = vmatprep.subr.bf16.mxu0 %v3326_v38  ;;  %v453_v36 = vsub.f32 %v3316_v45, %v452_v10  ;;  %v414_v34 = vsub.f32 %v3314_v6, %v413_v42 }
  0xf0   :  { %2613 = vmatpush3.bf16.msra.mxu0 %v3326_v38  ;;  %v405_v2 = vand.u32 4294901760, %v404_v9  ;;  %v2722_v9 = vpack.c.bf16 %v3189_v4, %v3182_v57 }
  0xf1   :  { %2615 = vmatprep.subr.bf16.mxu0 %v2614_v3  ;;  %v460_v63 = vsub.f32 %v3328_v15, %v459_v41  ;;  %v454_v35 = vand.u32 4294901760, %v453_v36  ;;  %v415_v61 = vand.u32 4294901760, %v414_v34 }
  0xf3   :  { %2315 = vmatmul.mubr.f32.vlgmr.msra.gmra.mrb[0].mxu0 %v375_v39  ;;  %v461_v14 = vand.u32 4294901760, %v460_v63  ;;  %v2630_v39 = vpack.c.bf16 %v3273_v13, %v3281_v18 }
  0xf4   :  { %2617 = vmatpush3.bf16.msra.mxu0 %v2614_v3  ;;  %2317 = vmatprep.mubr.f32.mxu0 %v385_v47 }
  0xf5   :  { %2619 = vmatprep.subr.bf16.mxu0 %v2618_v19  ;;  %v2622_v0 = vpack.c.bf16 %v461_v14, %v454_v35 }
  0xf7   :  { %2318 = vmatmul.mubr.f32.gmra.mrb[2].mxu0 %v395_v22 }
  0xf8   :  { %2621 = vmatpush3.bf16.msra.mxu0 %v2618_v19  ;;  %2320 = vmatprep.mubr.f32.mxu0 %v405_v2  ;;  %v2654_v2 = vpack.c.bf16 %v445_v33, %v438_v25 }
  0xf9   :  { %2623 = vmatprep.subr.bf16.mxu0 %v2622_v0 }
  0xfb   :  { %2321 = vmatmul.mubr.f32.gmra.mrb[4].mxu0 %v415_v61  ;;  %v2634_v61 = vpack.c.bf16 %v3328_v15, %v3316_v45 }
  0xfc   :  { %2625 = vmatpush3.bf16.msra.mxu0 %v2622_v0  ;;  %2335 = vmatprep.mubr.f32.mxu0 %v3145_v26  ;;  %v2650_v0 = vpack.c.bf16 %v431_v5, %v424_v16  ;;  %v2714_v5 = vpack.c.bf16 %v3172_v51, %v3170_v50  ;;  %v3724_v50 = vand.u32 4294901760, %v3189_v4 }
  0xfd   :  { %2627 = vmatprep.subr.bf16.mxu0 %v2626_v37 }
  0xff   :  { %2336 = vmatmul.mubr.f32.vlgmr.msra.gmra.mrb[0].mxu0 %v3252_v43 }
 0x100   :  { %2629 = vmatpush3.bf16.msra.mxu0 %v2626_v37  ;;  %2338 = vmatprep.mubr.f32.mxu0 %v3254_v44 }
 0x101   :  { %2631 = vmatprep.subr.bf16.mxu0 %v2630_v39 }
 0x103   :  { %2339 = vmatmul.mubr.f32.gmra.mrb[2].mxu0 %v3270_v58 }
 0x104   :  { %2633 = vmatpush3.bf16.msra.mxu0 %v2630_v39  ;;  %2341 = vmatprep.mubr.f32.mxu0 %v3279_v17 }
 0x105   :  { %2635 = vmatprep.subr.bf16.mxu0 %v2634_v61 }
 0x107   :  { %2342 = vmatmul.mubr.f32.gmra.mrb[4].mxu0 %v3289_v21 }
 0x108   :  { %2637 = vmatpush3.bf16.msra.mxu0 %v2634_v61  ;;  %2356 = vmatprep.mubr.f32.mxu0 %v3151_v28  ;;  %v2658_v28 = vpack.c.bf16 %v459_v41, %v452_v10 }
 0x109   :  { %2639 = vmatprep.subr.bf16.mxu0 %v3234_v7 }
 0x10b   :  { %2357 = vmatmul.mubr.f32.vlgmr.msra.gmra.mrb[0].mxu0 %v3264_v8 }
 0x10c   :  { %2641 = vmatpush3.bf16.msra.mxu0 %v3234_v7  ;;  %2359 = vmatprep.mubr.f32.mxu0 %v3268_v11 }
 0x10d   :  { %2643 = vmatprep.subr.bf16.mxu0 %v3250_v1 }
 0x10f   :  { %2360 = vmatmul.mubr.f32.gmra.mrb[2].mxu0 %v3287_v32 }
 0x110   :  { %2645 = vmatpush3.bf16.msra.mxu0 %v3250_v1  ;;  %2362 = vmatprep.mubr.f32.mxu0 %v3304_v12 }
 0x111   :  { %2647 = vmatprep.subr.bf16.mxu0 %v3326_v38 }
 0x113   :  { %2363 = vmatmul.mubr.f32.gmra.mrb[4].mxu0 %v3314_v6 }
 0x114   :  { %2649 = vmatpush3.bf16.msra.mxu0 %v3326_v38  ;;  %2377 = vmatprep.mubr.f32.mxu0 %v363_v30  ;;  %v1025_v30 = vld [vmem:[#allocation4 + $0x48] sm:$0xff] }
 0x115   :  { %2651 = vmatprep.subr.bf16.mxu0 %v2650_v0  ;;  %v1073_v36 = vand.u32 4294901760, %v1025_v30 }
 0x117   :  { %2378 = vmatmul.mubr.f32.vlgmr.msra.gmra.mrb[0].mxu0 %v373_v20 }
 0x118   :  { %2653 = vmatpush3.bf16.msra.mxu0 %v2650_v0  ;;  %2380 = vmatprep.mubr.f32.mxu0 %v383_v24 }
 0x119   :  { %2655 = vmatprep.subr.bf16.mxu0 %v2654_v2 }
 0x11b   :  { %2381 = vmatmul.mubr.f32.gmra.mrb[2].mxu0 %v393_v62  ;;  %v2718_v62 = vpack.c.bf16 %v3178_v55, %v3174_v52 }
 0x11c   :  { %2657 = vmatpush3.bf16.msra.mxu0 %v2654_v2  ;;  %2383 = vmatprep.mubr.f32.mxu0 %v403_v27 }
 0x11d   :  { %2659 = vmatprep.subr.bf16.mxu0 %v2658_v28 }
 0x11f   :  { %2384 = vmatmul.mubr.f32.gmra.mrb[4].mxu0 %v413_v42 }
 0x120   :  { %2661 = vmatpush3.bf16.msra.mxu0 %v2658_v28  ;;  %2398 = vmatprep.mubr.f32.mxu0 %v3145_v26 }
 0x121   :  { %2663 = vmatprep.subr.bf16.mxu0 %v3234_v7 }
 0x123   :  { %2399 = vmatmul.mubr.f32.vlgmr.msra.gmra.mrb[0].mxu0 %v3252_v43 }
 0x124   :  { %2665 = vmatpush3.bf16.msra.mxu0 %v3234_v7  ;;  %2401 = vmatprep.mubr.f32.mxu0 %v3254_v44 }
 0x125   :  { %2667 = vmatprep.subr.bf16.mxu0 %v3250_v1 }
 0x127   :  { %2402 = vmatmul.mubr.f32.gmra.mrb[2].mxu0 %v3270_v58 }
 0x128   :  { %2669 = vmatpush3.bf16.msra.mxu0 %v3250_v1  ;;  %2404 = vmatprep.mubr.f32.mxu0 %v3279_v17  ;;  %v1245_v1 = vsub.f32 %v1025_v30, %v1073_v36 }
 0x129   :  { %2671 = vmatprep.subr.bf16.mxu0 %v3326_v38 }
 0x12b   :  { %2405 = vmatmul.mubr.f32.gmra.mrb[4].mxu0 %v3289_v21 }
 0x12c   :  { %2673 = vmatpush3.bf16.msra.mxu0 %v3326_v38  ;;  %2419 = vmatprep.mubr.f32.mxu0 %v3145_v26  ;;  %v1024_v26 = vld [vmem:[#allocation4 + $0x40] sm:$0xff] }
 0x12d   :  { %2675 = vmatprep.subr.bf16.mxu0 %v3168_v49  ;;  %v1070_v14 = vand.u32 4294901760, %v1024_v26 }
 0x12f   :  { %2420 = vmatmul.mubr.f32.vlgmr.msra.gmra.mrb[0].mxu0 %v3252_v43  ;;  %v1238_v7 = vsub.f32 %v1024_v26, %v1070_v14  ;;  %v3428_v13 = vpack.c.bf16 %v1073_v36, %v1070_v14  ;;  %v2726_v26 = vpack.c.bf16 %v3214_v31, %v3212_v29 }
 0x130   :  { %2422 = vmatprep.mubr.f32.mxu0 %v3254_v44  ;;  %2677 = vmatpush3.bf16.msra.mxu0 %v3168_v49  ;;  %v1246_v44 = vand.u32 4294901760, %v1245_v1 }
 0x131   :  { %2679 = vmatprep.subr.bf16.mxu0 %v3176_v54  ;;  %v1239_v43 = vand.u32 4294901760, %v1238_v7  ;;  %v3432_v16 = vpack.c.bf16 %v1245_v1, %v1238_v7 }
 0x132   :  { %v1247_v53 = vsub.f32 %v1245_v1, %v1246_v44 }
 0x133   :  { %2423 = vmatmul.mubr.f32.gmra.mrb[2].mxu0 %v3270_v58  ;;  %v1240_v46 = vsub.f32 %v1238_v7, %v1239_v43 }
 0x134   :  { %2425 = vmatprep.mubr.f32.mxu0 %v3279_v17  ;;  %2681 = vmatpush3.bf16.msra.mxu0 %v3176_v54  ;;  %v1248_v11 = vand.u32 4294901760, %v1247_v53  ;;  %v3434_v17 = vpack.c.bf16 %v1246_v44, %v1239_v43 }
 0x135   :  { %2683 = vmatprep.subr.bf16.mxu0 %v3180_v56  ;;  %v1241_v8 = vand.u32 4294901760, %v1240_v46 }
 0x137   :  { %2426 = vmatmul.mubr.f32.gmra.mrb[4].mxu0 %v3289_v21  ;;  %v2710_v58 = vpack.c.bf16 %v1248_v11, %v1241_v8 }
 0x138   :  { %2685 = vmatpush3.bf16.msra.mxu0 %v3180_v56 }
 0x139   :  { %2687 = vmatprep.subr.bf16.mxu0 %v3210_v23  ;;  %2711 = vmatprep.subr.bf16.mxu1 %v2710_v58 }
 0x13a   :  { %2713 = vmatpush3.bf16.msra.mxu1 %v2710_v58  ;;  %v2754_v58 = vpack.c.bf16 %v1190_v60, %v1183_v59 }
 0x13b   :  { %2715 = vmatprep.subr.bf16.mxu1 %v2714_v5 }
 0x13c   :  { %2689 = vmatpush3.bf16.msra.mxu0 %v3210_v23 }
 0x13d   :  { %2691 = vmatprep.subr.bf16.mxu0 %v3428_v13 }
 0x140   :  { %2693 = vmatpush3.bf16.msra.mxu0 %v3428_v13 }
 0x202   :  { %v2421_v18 = vpop.f32.mrb[0].mxu0 }
 0x203   :  { %v1031_v20 = vsel %vm1026_vm4, %v2421_v18, 0  ;;  %v982_v24 = vpop.f32.mrb[1].mxu0 }
 0x204   :  { %v3437_v32 = vand.u32 4294901760, %v1031_v20  ;;  %v1028_v21 = vsel %vm1026_vm4, %v982_v24, 0 }
 0x205   :  { %v3440_v33 = vand.u32 4294901760, %v1028_v21 }
 0x206   :  { %v3443_v12 = vsub.f32 %v1031_v20, %v3437_v32  ;;  %v2424_v25 = vpop.f32.mrb[2].mxu0  ;;  %v3723_v20 = vand.u32 4294901760, %v3182_v57 }
 0x207   :  { %v3448_v6 = vsub.f32 %v1028_v21, %v3440_v33  ;;  %v1037_v45 = vsel %vm1026_vm4, %v2424_v25, 0  ;;  %v994_v27 = vpop.f32.mrb[3].mxu0  ;;  %2477 = vmatprep.mubr.f32.mxu1 %v3440_v33 }
 0x208   :  { %v1132_v10 = vand.u32 4294901760, %v3443_v12  ;;  %v3453_v38 = vand.u32 4294901760, %v1037_v45  ;;  %v1034_v15 = vsel %vm1026_vm4, %v994_v27, 0  ;;  %2478 = vmatmul.mubr.f32.vlgmr.msra.gmra.mrb[0].mxu1 %v3437_v32  ;;  %v2762_v51 = vpack.c.bf16 %v3724_v50, %v3723_v20  ;;  %v2886_v50 = vld [vmem:[#allocation6 + $0x10] sm:$0xff] }
 0x209   :  { %v1122_v40 = vand.u32 4294901760, %v3448_v6  ;;  %v3458_v41 = vand.u32 4294901760, %v1034_v15  ;;  %2717 = vmatpush3.bf16.msra.mxu1 %v2714_v5  ;;  %v3721_v5 = vand.u32 4294901760, %v3174_v52  ;;  %v3725_v52 = vand.u32 4294901760, %v3212_v29 }
 0x20a   :  { %v1133_v3 = vsub.f32 %v3443_v12, %v1132_v10  ;;  %v3464_v42 = vsub.f32 %v1037_v45, %v3453_v38  ;;  %v2427_v47 = vpop.f32.mrb[4].mxu0  ;;  %2719 = vmatprep.subr.bf16.mxu1 %v2718_v62 }
 0x20b   :  { %v1141_v48 = vsub.f32 %v1034_v15, %v3458_v41  ;;  %v1043_v63 = vsel %vm1026_vm4, %v2427_v47, 0  ;;  %v1006_v19 = vpop.f32.mrb[5].mxu0  ;;  %2480 = vmatprep.mubr.f32.mxu1 %v3458_v41  ;;  %v1123_v22 = vsub.f32 %v3448_v6, %v1122_v40 }
 0x20c   :  { %v1152_v34 = vand.u32 4294901760, %v3464_v42  ;;  %v3473_v35 = vand.u32 4294901760, %v1043_v63  ;;  %v1040_v37 = vsel %vm1026_vm4, %v1006_v19, 0  ;;  %2481 = vmatmul.mubr.f32.gmra.mrb[2].mxu1 %v3453_v38  ;;  %v1134_v2 = vand.u32 4294901760, %v1133_v3 }
 0x20d   :  { %v1142_v39 = vand.u32 4294901760, %v1141_v48  ;;  %v3477_v61 = vand.u32 4294901760, %v1040_v37  ;;  %2721 = vmatpush3.bf16.msra.mxu1 %v2718_v62  ;;  %v1124_v0 = vand.u32 4294901760, %v1123_v22 }
 0x20e   :  { %v1171_v28 = vsub.f32 %v1043_v63, %v3473_v35  ;;  %2723 = vmatprep.subr.bf16.mxu1 %v2722_v9  ;;  %v1153_v30 = vsub.f32 %v3464_v42, %v1152_v34 }
 0x20f   :  { %v1161_v14 = vsub.f32 %v1040_v37, %v3477_v61  ;;  %2448 = vmatprep.mubr.f32.mxu0 %v1124_v0  ;;  %2483 = vmatprep.mubr.f32.mxu1 %v3477_v61  ;;  %v1143_v36 = vsub.f32 %v1141_v48, %v1142_v39 }
 0x210   :  { %v1172_v7 = vand.u32 4294901760, %v1171_v28  ;;  %2449 = vmatmul.mubr.f32.vlgmr.msra.gmra.mrb[6].mxu0 %v1134_v2  ;;  %2484 = vmatmul.mubr.f32.gmra.mrb[4].mxu1 %v3473_v35  ;;  %v1154_v44 = vand.u32 4294901760, %v1153_v30 }
 0x211   :  { %v1162_v1 = vand.u32 4294901760, %v1161_v14  ;;  %2725 = vmatpush3.bf16.msra.mxu1 %v2722_v9  ;;  %2506 = vmatprep.mubr.f32.mxu1 %v3448_v6  ;;  %v1144_v43 = vand.u32 4294901760, %v1143_v36 }
 0x212   :  { %2727 = vmatprep.subr.bf16.mxu1 %v2726_v26  ;;  %v1173_v46 = vsub.f32 %v1171_v28, %v1172_v7 }
 0x213   :  { %2451 = vmatprep.mubr.f32.mxu0 %v1144_v43  ;;  %v1163_v53 = vsub.f32 %v1161_v14, %v1162_v1 }
 0x214   :  { %2452 = vmatmul.mubr.f32.gmra.mrb[8].mxu0 %v1154_v44  ;;  %v1174_v11 = vand.u32 4294901760, %v1173_v46  ;;  %v2882_v44 = vld [vmem:[#allocation7] sm:$0xff]  ;;  %v2883_v46 = vld [vmem:[#allocation6] sm:$0xff] }
 0x215   :  { %2729 = vmatpush3.bf16.msra.mxu1 %v2726_v26  ;;  %v1164_v8 = vand.u32 4294901760, %v1163_v53  ;;  %v86_v53 = vsub.f32 %v2883_v46, %v2882_v44 }
 0x216   :  { %2731 = vmatprep.subr.bf16.mxu1 %v3432_v16 }
 0x217   :  { %2454 = vmatprep.mubr.f32.mxu0 %v1164_v8  ;;  %v2884_v8 = vld [vmem:[#allocation6 + $0x8] sm:$0xff] }
 0x218   :  { %2455 = vmatmul.mubr.f32.gmra.mrb[10].mxu0 %v1174_v11  ;;  %v2885_v11 = vld [vmem:[#allocation7 + $0x8] sm:$0xff] }
 0x219   :  { %2733 = vmatpush3.bf16.msra.mxu1 %v3432_v16  ;;  %v3722_v16 = vand.u32 4294901760, %v3178_v55  ;;  %v3726_v55 = vand.u32 4294901760, %v3214_v31 }
 0x21a   :  { %2735 = vmatprep.subr.bf16.mxu1 %v3168_v49 }
 0x21b   :  { %v2758_v18 = vpack.c.bf16 %v3722_v16, %v3721_v5  ;;  %v2766_v59 = vpack.c.bf16 %v3726_v55, %v3725_v52 }
 0x21c   :  { %2507 = vmatmul.mubr.f32.vlgmr.msra.gmra.mrb[0].mxu1 %v3443_v12 }
 0x21d   :  { %2509 = vmatprep.mubr.f32.mxu1 %v1141_v48  ;;  %2737 = vmatpush3.bf16.msra.mxu1 %v3168_v49 }
 0x21e   :  { %2739 = vmatprep.subr.bf16.mxu1 %v3176_v54 }
 0x220   :  { %2510 = vmatmul.mubr.f32.gmra.mrb[2].mxu1 %v3464_v42 }
 0x221   :  { %2512 = vmatprep.mubr.f32.mxu1 %v1161_v14  ;;  %2741 = vmatpush3.bf16.msra.mxu1 %v3176_v54 }
 0x222   :  { %2743 = vmatprep.subr.bf16.mxu1 %v3180_v56 }
 0x224   :  { %2513 = vmatmul.mubr.f32.gmra.mrb[4].mxu1 %v1171_v28 }
 0x225   :  { %2745 = vmatpush3.bf16.msra.mxu1 %v3180_v56  ;;  %2535 = vmatprep.mubr.f32.mxu1 %v1122_v40 }
 0x226   :  { %2747 = vmatprep.subr.bf16.mxu1 %v3210_v23 }
 0x229   :  { %2749 = vmatpush3.bf16.msra.mxu1 %v3210_v23 }
 0x22a   :  { %2751 = vmatprep.subr.bf16.mxu1 %v3428_v13 }
 0x22d   :  { %2753 = vmatpush3.bf16.msra.mxu1 %v3428_v13 }
 0x22e   :  { %2755 = vmatprep.subr.bf16.mxu1 %v2754_v58 }
 0x230   :  { %2536 = vmatmul.mubr.f32.vlgmr.msra.gmra.mrb[0].mxu1 %v1132_v10 }
 0x231   :  { %2538 = vmatprep.mubr.f32.mxu1 %v1142_v39  ;;  %2757 = vmatpush3.bf16.msra.mxu1 %v2754_v58  ;;  %v87_v58 = vsub.f32 %v2884_v8, %v2885_v11 }
 0x232   :  { %2759 = vmatprep.subr.bf16.mxu1 %v2758_v18 }
 0x234   :  { %2539 = vmatmul.mubr.f32.gmra.mrb[2].mxu1 %v1152_v34 }
 0x235   :  { %2541 = vmatprep.mubr.f32.mxu1 %v1162_v1  ;;  %2761 = vmatpush3.bf16.msra.mxu1 %v2758_v18 }
 0x236   :  { %2763 = vmatprep.subr.bf16.mxu1 %v2762_v51 }
 0x238   :  { %2542 = vmatmul.mubr.f32.gmra.mrb[4].mxu1 %v1172_v7 }
 0x239   :  { %2765 = vmatpush3.bf16.msra.mxu1 %v2762_v51  ;;  %2564 = vmatprep.mubr.f32.mxu1 %v3440_v33  ;;  %v2887_v51 = vld [vmem:[#allocation7 + $0x10] sm:$0xff] }
 0x23a   :  { %2767 = vmatprep.subr.bf16.mxu1 %v2766_v59  ;;  %v88_v52 = vsub.f32 %v2886_v50, %v2887_v51 }
 0x23d   :  { %2769 = vmatpush3.bf16.msra.mxu1 %v2766_v59 }
 0x23e   :  { %2771 = vmatprep.subr.bf16.mxu1 %v3434_v17 }
 0x241   :  { %2773 = vmatpush3.bf16.msra.mxu1 %v3434_v17 }
 0x242   :  { %2775 = vmatprep.subr.bf16.mxu1 %v3168_v49 }
 0x244   :  { %2565 = vmatmul.mubr.f32.vlgmr.msra.gmra.mrb[0].mxu1 %v3437_v32 }
 0x245   :  { %2567 = vmatprep.mubr.f32.mxu1 %v3458_v41  ;;  %2777 = vmatpush3.bf16.msra.mxu1 %v3168_v49 }
 0x246   :  { %2779 = vmatprep.subr.bf16.mxu1 %v3176_v54 }
 0x248   :  { %2568 = vmatmul.mubr.f32.gmra.mrb[2].mxu1 %v3453_v38 }
 0x249   :  { %2570 = vmatprep.mubr.f32.mxu1 %v3477_v61  ;;  %2781 = vmatpush3.bf16.msra.mxu1 %v3176_v54 }
 0x24a   :  { %2783 = vmatprep.subr.bf16.mxu1 %v3180_v56 }
 0x24c   :  { %2571 = vmatmul.mubr.f32.gmra.mrb[4].mxu1 %v3473_v35 }
 0x24d   :  { %2785 = vmatpush3.bf16.msra.mxu1 %v3180_v56  ;;  %2593 = vmatprep.mubr.f32.mxu1 %v3440_v33 }
 0x24e   :  { %2787 = vmatprep.subr.bf16.mxu1 %v3210_v23 }
 0x251   :  { %2789 = vmatpush3.bf16.msra.mxu1 %v3210_v23 }
 0x252   :  { %2791 = vmatprep.subr.bf16.mxu1 %v3428_v13 }
 0x255   :  { %2793 = vmatpush3.bf16.msra.mxu1 %v3428_v13 }
 0x258   :  { %2594 = vmatmul.mubr.f32.vlgmr.msra.gmra.mrb[0].mxu1 %v3437_v32 }
 0x259   :  { %2596 = vmatprep.mubr.f32.mxu1 %v3458_v41 }
 0x25c   :  { %2597 = vmatmul.mubr.f32.gmra.mrb[2].mxu1 %v3453_v38 }
 0x25d   :  { %2599 = vmatprep.mubr.f32.mxu1 %v3477_v61 }
 0x260   :  { %2600 = vmatmul.mubr.f32.gmra.mrb[4].mxu1 %v3473_v35 }
 0x2e3   :  { %v2450_v49 = vpop.f32.mrb[6].mxu0 }
 0x2e4   :  { %v1126_v54 = vpop.f32.mrb[7].mxu0 }
 0x2e7   :  { %v2453_v56 = vpop.f32.mrb[8].mxu0 }
 0x2e8   :  { %v1146_v57 = vpop.f32.mrb[9].mxu0 }
 0x2eb   :  { %v2456_v60 = vpop.f32.mrb[10].mxu0 }
 0x2ec   :  { %v1166_v4 = vpop.f32.mrb[11].mxu0 }
 0x32b   :  { %v2595_v23 = vpop.f32.mrb[0].mxu1 }
 0x32c   :  { %v3543_v29 = vadd.f32 %v2595_v23, %v2450_v49  ;;  %v1789_v31 = vpop.f32.mrb[1].mxu1  ;;  %v92_v49 = vand.u32 2147483647, %v86_v53 }
 0x32d   :  { %v3545_v13 = vadd.f32 %v1789_v31, %v1126_v54  ;;  %v93_v54 = vand.u32 2147483647, %v87_v58  ;;  %v94_v31 = vand.u32 2147483647, %v88_v52 }
 0x32e   :  { %v3549_v17 = vmul.f32 %v3543_v29, %v3543_v29 }
 0x32f   :  { %v2598_v24 = vpop.f32.mrb[2].mxu1  ;;  %v3553_v32 = vmul.f32 %v3545_v13, %v3545_v13 }
 0x330   :  { %v3555_v21 = vadd.f32 %v2598_v24, %v2453_v56  ;;  %1867 = vrot.lane.b32.xlu1 %v3549_v17, %s2995_s17  ;;  %v1801_v33 = vpop.f32.mrb[3].mxu1 }
 0x331   :  { %v3559_v12 = vadd.f32 %v1801_v33, %v1146_v57  ;;  %1865 = vrot.lane.b32.xlu0 %v3553_v32, %s2995_s17 }
 0x332   :  { %v3565_v25 = vmul.f32 %v3555_v21, %v3555_v21 }
 0x333   :  { %v2601_v62 = vpop.f32.mrb[4].mxu1  ;;  %v3569_v6 = vmul.f32 %v3559_v12, %v3559_v12 }
 0x334   :  { %v3571_v45 = vadd.f32 %v2601_v62, %v2456_v60  ;;  %1871 = vrot.lane.b32.xlu1 %v3565_v25, %s2995_s17  ;;  %v1813_v27 = vpop.f32.mrb[5].mxu1  ;;  %v2888_v60 = vld [vmem:[#allocation6 + $0x18] sm:$0xff] }
 0x335   :  { %v3575_v10 = vadd.f32 %v1813_v27, %v1166_v4  ;;  %1869 = vrot.lane.b32.xlu0 %v3569_v6, %s2995_s17  ;;  %v2889_v4 = vld [vmem:[#allocation7 + $0x18] sm:$0xff]  ;;  %v98_v27 = vmul.f32 2.0, %v92_v49 }
 0x336   :  { %v3581_v38 = vmul.f32 %v3571_v45, %v3571_v45  ;;  %v89_v23 = vsub.f32 %v2888_v60, %v2889_v4  ;;  %v2892_v4 = vld [vmem:[#allocation7 + $0x28] sm:$0xff] }
 0x337   :  { %v3585_v15 = vmul.f32 %v3575_v10, %v3575_v10 }
 0x338   :  { %1875 = vrot.lane.b32.xlu1 %v3581_v38, %s2995_s17 }
 0x339   :  { %1873 = vrot.lane.b32.xlu0 %v3585_v15, %s2995_s17 }
 0x33c   :  { %1837 = vrot.lane.b32.xlu1 %v3543_v29, %s2998_s6 }
 0x33d   :  { %1835 = vrot.lane.b32.xlu0 %v3545_v13, %s2998_s6 }
 0x340   :  { %1841 = vrot.lane.b32.xlu1 %v3555_v21, %s2998_s6 }
 0x341   :  { %1839 = vrot.lane.b32.xlu0 %v3559_v12, %s2998_s6 }
 0x344   :  { %1845 = vrot.lane.b32.xlu1 %v3571_v45, %s2998_s6 }
 0x345   :  { %1843 = vrot.lane.b32.xlu0 %v3575_v10, %s2998_s6 }
 0x3a2   :  { %v1868_v40 = vpop.permute.xlu1 %1867 }
 0x3a3   :  { %v1884_v41 = vsub.f32 %v3543_v29, %v1868_v40  ;;  %v1866_v3 = vpop.permute.xlu0 %1865  ;;  %v99_v40 = vmul.f32 2.0, %v93_v54 }
 0x3a4   :  { %v1883_v42 = vsub.f32 %v3545_v13, %v1866_v3 }
 0x3a5   :  { %2011 = vrot.lane.b32.xlu1 %v1884_v41, %s2998_s6 }
 0x3a6   :  { %v1872_v47 = vpop.permute.xlu1 %1871  ;;  %2009 = vrot.lane.b32.xlu0 %v1883_v42, %s2998_s6 }
 0x3a7   :  { %v1886_v9 = vsub.f32 %v3555_v21, %v1872_v47  ;;  %v1870_v48 = vpop.permute.xlu0 %1869  ;;  %v100_v47 = vmul.f32 2.0, %v94_v31 }
 0x3a8   :  { %v1885_v63 = vsub.f32 %v3559_v12, %v1870_v48 }
 0x3a9   :  { %2015 = vrot.lane.b32.xlu1 %v1886_v9, %s2998_s6  ;;  %v108_v46 = vsel %vm104_vm1, %v100_v47, 0.0 }
 0x3aa   :  { %v1876_v19 = vpop.permute.xlu1 %1875  ;;  %2013 = vrot.lane.b32.xlu0 %v1885_v63, %s2998_s6 }
 0x3ab   :  { %v3612_v22 = vsub.f32 %v3571_v45, %v1876_v19  ;;  %v1874_v34 = vpop.permute.xlu0 %1873 }
 0x3ac   :  { %v1887_v35 = vsub.f32 %v3575_v10, %v1874_v34 }
 0x3ad   :  { %2019 = vrot.lane.b32.xlu1 %v3612_v22, %s2998_s6 }
 0x3ae   :  { %v1838_v37 = vpop.permute.xlu1 %1837  ;;  %2017 = vrot.lane.b32.xlu0 %v1887_v35, %s2998_s6 }
 0x3af   :  { %v3619_v39 = vmul.f32 %v3543_v29, %v1838_v37  ;;  %v1836_v61 = vpop.permute.xlu0 %1835 }
 0x3b0   :  { %v3622_v0 = vmul.f32 %v3545_v13, %v1836_v61  ;;  %v105_v61 = vsel %vm104_vm1, %v98_v27, 0.0 }
 0x3b1   :  { %1897 = vrot.lane.b32.xlu1 %v3619_v39, %s2997_s30 }
 0x3b2   :  { %v1842_v2 = vpop.permute.xlu1 %1841  ;;  %1895 = vrot.lane.b32.xlu0 %v3622_v0, %s2997_s30 }
 0x3b3   :  { %v3629_v28 = vmul.f32 %v3555_v21, %v1842_v2  ;;  %v1840_v26 = vpop.permute.xlu0 %1839  ;;  %v106_v2 = vsel %vm104_vm1, %v99_v40, 0.0 }
 0x3b4   :  { %v3632_v30 = vmul.f32 %v3559_v12, %v1840_v26  ;;  %v107_v26 = vadd.f32 %v106_v2, %v105_v61 }
 0x3b5   :  { %1901 = vrot.lane.b32.xlu1 %v3629_v28, %s2997_s30 }
 0x3b6   :  { %v1846_v14 = vpop.permute.xlu1 %1845  ;;  %1899 = vrot.lane.b32.xlu0 %v3632_v30, %s2997_s30 }
 0x3b7   :  { %v3639_v36 = vmul.f32 %v3571_v45, %v1846_v14  ;;  %v1844_v7 = vpop.permute.xlu0 %1843 }
 0x3b8   :  { %v3642_v1 = vmul.f32 %v3575_v10, %v1844_v7 }
 0x3b9   :  { %1905 = vrot.lane.b32.xlu1 %v3639_v36, %s2997_s30 }
 0x3ba   :  { %1903 = vrot.lane.b32.xlu0 %v3642_v1, %s2997_s30 }
 0x3bd   :  { %1975 = vrot.lane.b32.xlu1 %v3549_v17, %s2998_s6 }
 0x3be   :  { %1973 = vrot.lane.b32.xlu0 %v3553_v32, %s2998_s6 }
 0x3c1   :  { %1979 = vrot.lane.b32.xlu1 %v3565_v25, %s2998_s6 }
 0x3c2   :  { %1977 = vrot.lane.b32.xlu0 %v3569_v6, %s2998_s6 }
 0x3c6   :  { %1981 = vrot.lane.b32.xlu0 %v3585_v15, %s2998_s6 }
 0x417   :  { %v2012_v43 = vpop.permute.xlu1 %2011 }
 0x418   :  { %v2028_v5 = vadd.f32 %v2012_v43, %v1884_v41  ;;  %v2010_v16 = vpop.permute.xlu0 %2009 }
 0x419   :  { %v2027_v18 = vadd.f32 %v2010_v16, %v1883_v42  ;;  %v95_v42 = vand.u32 2147483647, %v89_v23 }
 0x41a   :  { %v2034_v20 = vadd.f32 0.0009, %v2028_v5 }
 0x41b   :  { %v2033_v55 = vadd.f32 0.0009, %v2027_v18  ;;  %v2016_v59 = vpop.permute.xlu1 %2015  ;;  %v101_v14 = vmul.f32 2.0, %v95_v42 }
 0x41c   :  { %2047 = vrot.lane.b32.xlu1 %v2034_v20, %s2999_s18  ;;  %v2014_v56 = vpop.permute.xlu0 %2013  ;;  %v2030_v24 = vadd.f32 %v2016_v59, %v1886_v9 }
 0x41d   :  { %v2029_v57 = vadd.f32 %v2014_v56, %v1885_v63  ;;  %2045 = vrot.lane.b32.xlu0 %v2033_v55, %s2999_s18  ;;  %v110_v58 = vsel %vm104_vm1, %v101_v14, 0.0 }
 0x41e   :  { %v2036_v48 = vadd.f32 0.0009, %v2030_v24 }
 0x41f   :  { %v2035_v33 = vadd.f32 0.0009, %v2029_v57  ;;  %v2020_v62 = vpop.permute.xlu1 %2019  ;;  %v2891_v57 = vld [vmem:[#allocation6 + $0x20] sm:$0xff] }
 0x420   :  { %v2018_v41 = vpop.permute.xlu0 %2017  ;;  %v2032_v63 = vadd.f32 %v2020_v62, %v3612_v22 }
 0x421   :  { %v2031_v3 = vadd.f32 %v2018_v41, %v1887_v35  ;;  %1983 = vrot.lane.b32.xlu0 %v3581_v38, %s2998_s6  ;;  %2049 = vrot.lane.b32.xlu1 %v2035_v33, %s2999_s18 }
 0x422   :  { %v2038_v7 = vadd.f32 0.0009, %v2032_v63 }
 0x423   :  { %v2037_v19 = vadd.f32 0.0009, %v2031_v3  ;;  %v1898_v34 = vpop.permute.xlu1 %1897 }
 0x424   :  { %v1914_v9 = vsub.f32 %v3543_v29, %v1898_v34  ;;  %v1896_v37 = vpop.permute.xlu0 %1895 }
 0x425   :  { %v1913_v35 = vsub.f32 %v3545_v13, %v1896_v37  ;;  %2051 = vrot.lane.b32.xlu1 %v2036_v48, %s2999_s18  ;;  %2053 = vrot.lane.b32.xlu0 %v2037_v19, %s2999_s18  ;;  %v109_v13 = vadd.f32 %v108_v46, %v107_v26 }
 0x426   :  { %v1932_v43 = vmul.f32 2.0, %v1914_v9 }
 0x427   :  { %v1931_v22 = vmul.f32 2.0, %v1913_v35  ;;  %v1902_v44 = vpop.permute.xlu1 %1901  ;;  %v111_v50 = vadd.f32 %v110_v58, %v109_v13 }
 0x428   :  { %v1916_v29 = vsub.f32 %v3555_v21, %v1902_v44  ;;  %v1900_v53 = vpop.permute.xlu0 %1899  ;;  %v1938_v5 = vadd.f32 0.0009, %v1932_v43 }
 0x429   :  { %v1937_v8 = vadd.f32 0.0009, %v1931_v22  ;;  %v1915_v11 = vsub.f32 %v3559_v12, %v1900_v53  ;;  %2055 = vrot.lane.b32.xlu1 %v2038_v7, %s2999_s18 }
 0x42a   :  { %v1934_v16 = vmul.f32 2.0, %v1916_v29 }
 0x42b   :  { %v1933_v18 = vmul.f32 2.0, %v1915_v11  ;;  %v1906_v20 = vpop.permute.xlu1 %1905  ;;  %1949 = vrot.lane.b32.xlu0 %v1937_v8, %s2997_s30 }
 0x42c   :  { %v1918_v51 = vsub.f32 %v3571_v45, %v1906_v20  ;;  %v1904_v52 = vpop.permute.xlu0 %1903  ;;  %v1940_v12 = vadd.f32 0.0009, %v1934_v16  ;;  %v2890_v45 = vld [vmem:[#allocation7 + $0x20] sm:$0xff] }
 0x42d   :  { %v1939_v21 = vadd.f32 0.0009, %v1933_v18  ;;  %v1917_v55 = vsub.f32 %v3575_v10, %v1904_v52  ;;  %1951 = vrot.lane.b32.xlu1 %v1938_v5, %s2997_s30  ;;  %v90_v60 = vsub.f32 %v2891_v57, %v2890_v45  ;;  %v2893_v10 = vld [vmem:[#allocation6 + $0x28] sm:$0xff]  ;;  %v1920_v5 = vmul.f32 2.0, %v3619_v39 }
 0x42e   :  { %v1936_v59 = vmul.f32 2.0, %v1918_v51  ;;  %v91_v23 = vsub.f32 %v2893_v10, %v2892_v4 }
 0x42f   :  { %v1935_v49 = vmul.f32 2.0, %v1917_v55  ;;  %1953 = vrot.lane.b32.xlu0 %v1939_v21, %s2997_s30  ;;  %v96_v31 = vand.u32 2147483647, %v90_v60  ;;  %v1976_v47 = vpop.permute.xlu1 %1975 }
 0x430   :  { %v1942_v56 = vadd.f32 0.0009, %v1936_v59  ;;  %v97_v24 = vand.u32 2147483647, %v91_v23  ;;  %v1974_v42 = vpop.permute.xlu0 %1973  ;;  %v1992_v63 = vadd.f32 %v1976_v47, %v3549_v17  ;;  %v1922_v23 = vmul.f32 2.0, %v3629_v28 }
 0x431   :  { %v1941_v54 = vadd.f32 0.0009, %v1935_v49  ;;  %1955 = vrot.lane.b32.xlu1 %v1940_v12, %s2997_s30  ;;  %v102_v33 = vmul.f32 2.0, %v96_v31  ;;  %v1991_v19 = vadd.f32 %v1974_v42, %v3553_v32  ;;  %v1921_v12 = vmul.f32 2.0, %v3632_v30 }
 0x432   :  { %v103_v62 = vmul.f32 2.0, %v97_v24  ;;  %v1998_v37 = vadd.f32 0.0001, %v1992_v63 }
 0x433   :  { %1957 = vrot.lane.b32.xlu0 %v1941_v54, %s2997_s30  ;;  %v112_v27 = vsel %vm104_vm1, %v102_v33, 0.0  ;;  %v1980_v34 = vpop.permute.xlu1 %1979  ;;  %v1997_v61 = vadd.f32 0.0001, %v1991_v19  ;;  %v1927_v33 = vadd.f32 0.0001, %v1921_v12 }
 0x434   :  { %v113_v40 = vadd.f32 %v112_v27, %v111_v50  ;;  %v114_v41 = vsel %vm104_vm1, %v103_v62, 0.0  ;;  %v1978_v48 = vpop.permute.xlu0 %1977  ;;  %v1994_v43 = vadd.f32 %v1980_v34, %v3565_v25  ;;  %v1923_v27 = vmul.f32 2.0, %v3642_v1 }
 0x435   :  { %1959 = vrot.lane.b32.xlu1 %v1942_v56, %s2997_s30  ;;  %v1993_v2 = vadd.f32 %v1978_v48, %v3569_v6  ;;  %v1924_v34 = vmul.f32 2.0, %v3639_v36 }
 0x436   :  { %v115_v3 = vadd.f32 %v114_v41, %v113_v40  ;;  %v2000_v29 = vadd.f32 0.0001, %v1994_v43  ;;  %v1929_v1 = vadd.f32 0.0001, %v1923_v27 }
 0x437   :  { %v1999_v22 = vadd.f32 0.0001, %v1993_v2 }
 0x438   :  { %v1982_v9 = vpop.permute.xlu0 %1981 }
 0x439   :  { %v1995_v44 = vadd.f32 %v1982_v9, %v3585_v15  ;;  %v1919_v15 = vmul.f32 2.0, %v3622_v0 }
 0x43b   :  { %v2001_v53 = vadd.f32 0.0001, %v1995_v44  ;;  %v1925_v49 = vadd.f32 0.0001, %v1919_v15 }
 0x452   :  { %116 = vadd.xlane.f32.xlu0 %v115_v3 }
 0x48e   :  { %v2048_v35 = vpop.permute.xlu1 %2047 }
 0x48f   :  { %v2064_v26 = vmul.f32 %v2048_v35, %v1998_v37  ;;  %v2046_v14 = vpop.permute.xlu0 %2045  ;;  %v1928_v37 = vadd.f32 0.0001, %v1922_v23 }
 0x490   :  { %v2063_v7 = vmul.f32 %v2046_v14, %v1997_v61 }
 0x491   :  { %2870 = vrcp.f32 %v2064_v26 }
 0x492   :  { %2872 = vrcp.f32 %v2063_v7 }
 0x493   :  { %v2050_v17 = vpop.permute.xlu1 %2049  ;;  %v1984_v46 = vpop.permute.xlu0 %1983 }
 0x494   :  { %v2065_v32 = vmul.f32 %v2050_v17, %v1999_v22  ;;  %v1996_v8 = vadd.f32 %v1984_v46, %v3581_v38  ;;  %v1926_v38 = vadd.f32 0.0001, %v1920_v5 }
 0x496   :  { %2874 = vrcp.f32 %v2065_v32  ;;  %v2002_v16 = vadd.f32 0.0001, %v1996_v8 }
 0x497   :  { %v2052_v6 = vpop.permute.xlu1 %2051  ;;  %v2054_v11 = vpop.permute.xlu0 %2053 }
 0x498   :  { %v2066_v13 = vmul.f32 %v2052_v6, %v2000_v29  ;;  %v2067_v58 = vmul.f32 %v2054_v11, %v2001_v53  ;;  %v1930_v53 = vadd.f32 0.0001, %v1924_v34 }
 0x49a   :  { %2876 = vrcp.f32 %v2066_v13 }
 0x49b   :  { %v2871_v25 = vpop.eup %2870  ;;  %2878 = vrcp.f32 %v2067_v58  ;;  %v2056_v18 = vpop.permute.xlu1 %2055 }
 0x49c   :  { %v2873_v20 = vpop.eup %2872  ;;  %v2076_v50 = vmul.f32 %v2871_v25, %v2064_v26  ;;  %v2068_v51 = vmul.f32 %v2056_v18, %v2002_v16 }
 0x49d   :  { %v2075_v52 = vmul.f32 %v2873_v20, %v2063_v7  ;;  %v1950_v21 = vpop.permute.xlu0 %1949 }
 0x49e   :  { %v2082_v55 = vsub.f32 2.0, %v2076_v50  ;;  %2880 = vrcp.f32 %v2068_v51  ;;  %v1967_v60 = vmul.f32 %v1950_v21, %v1925_v49 }
 0x49f   :  { %v2081_v59 = vsub.f32 2.0, %v2075_v52  ;;  %v1952_v39 = vpop.permute.xlu1 %1951 }
 0x4a0   :  { %v2875_v54 = vpop.eup %2874  ;;  %v2088_v56 = vmul.f32 %v2871_v25, %v2082_v55  ;;  %v1968_v45 = vmul.f32 %v1952_v39, %v1926_v38 }
 0x4a1   :  { %v2077_v57 = vmul.f32 %v2875_v54, %v2065_v32  ;;  %v2087_v0 = vmul.f32 %v2873_v20, %v2081_v59  ;;  %v1954_v4 = vpop.permute.xlu0 %1953 }
 0x4a2   :  { %v2094_v10 = vmul.f32 %v2088_v56, %v1968_v45  ;;  %v1969_v48 = vmul.f32 %v1954_v4, %v1927_v33 }
 0x4a3   :  { %v2083_v31 = vsub.f32 2.0, %v2077_v57  ;;  %v2093_v24 = vmul.f32 %v2087_v0, %v1967_v60  ;;  %v1956_v40 = vpop.permute.xlu1 %1955 }
 0x4a4   :  { %v2877_v62 = vpop.eup %2876  ;;  %v2100_v30 = vsel %vm104_vm1, %v2094_v10, 0.0  ;;  %v1970_v43 = vmul.f32 %v1956_v40, %v1928_v37 }
 0x4a5   :  { %v2879_v41 = vpop.eup %2878  ;;  %v2078_v3 = vmul.f32 %v2877_v62, %v2066_v13  ;;  %v2099_v42 = vsel %vm104_vm1, %v2093_v24, 0.0  ;;  %v2089_v47 = vmul.f32 %v2875_v54, %v2083_v31  ;;  %v1958_v61 = vpop.permute.xlu0 %1957 }
 0x4a6   :  { %v2079_v63 = vmul.f32 %v2879_v41, %v2067_v58  ;;  %v2101_v19 = vadd.f32 %v2100_v30, %v2099_v42  ;;  %v1971_v17 = vmul.f32 %v1958_v61, %v1929_v1 }
 0x4a7   :  { %v2084_v28 = vsub.f32 2.0, %v2078_v3  ;;  %v2095_v9 = vmul.f32 %v2089_v47, %v1969_v48  ;;  %v1960_v46 = vpop.permute.xlu1 %1959 }
 0x4a8   :  { %v2881_v2 = vpop.eup %2880  ;;  %v2085_v35 = vsub.f32 2.0, %v2079_v63  ;;  %v1972_v6 = vmul.f32 %v1960_v46, %v1930_v53 }
 0x4a9   :  { %v2080_v26 = vmul.f32 %v2881_v2, %v2068_v51  ;;  %v2102_v14 = vsel %vm104_vm1, %v2095_v9, 0.0  ;;  %v2090_v7 = vmul.f32 %v2877_v62, %v2084_v28 }
 0x4aa   :  { %v2103_v22 = vadd.f32 %v2102_v14, %v2101_v19  ;;  %v2091_v44 = vmul.f32 %v2879_v41, %v2085_v35 }
 0x4ab   :  { %v2086_v32 = vsub.f32 2.0, %v2080_v26  ;;  %v2096_v29 = vmul.f32 %v2090_v7, %v1970_v43 }
 0x4ac   :  { %v2097_v36 = vmul.f32 %v2091_v44, %v1971_v17 }
 0x4ad   :  { %v2104_v8 = vsel %vm104_vm1, %v2096_v29, 0.0  ;;  %v2092_v11 = vmul.f32 %v2881_v2, %v2086_v32 }
 0x4ae   :  { %v2105_v13 = vadd.f32 %v2104_v8, %v2103_v22  ;;  %v2106_v5 = vsel %vm104_vm1, %v2097_v36, 0.0 }
 0x4af   :  { %v2098_v58 = vmul.f32 %v2092_v11, %v1972_v6 }
 0x4b0   :  { %v2107_v16 = vadd.f32 %v2106_v5, %v2105_v13 }
 0x4b1   :  { %v2108_v25 = vsel %vm104_vm1, %v2098_v58, 0.0 }
 0x4b2   :  { %v2109_v15 = vadd.f32 %v2108_v25, %v2107_v16 }
 0x4b4   :  { %2110 = vadd.xlane.f32.xlu1 %v2109_v15 }
 0x4df   :  { %v117_v18 = vpop.xlane.xlu0 %116 }
 0x4e0   :  { %v118_v20 = vrot.slane %v117_v18, 4 }
 0x4e2   :  { %v119_v50 = vadd.f32 %v118_v20, %v117_v18 }
 0x4e4   :  { %v120_v51 = vrot.slane %v119_v50, 2 }
 0x4e6   :  { %v121_v52 = vadd.f32 %v120_v51, %v119_v50 }
 0x4e8   :  { %v122_v21 = vrot.slane %v121_v52, 1 }
 0x4ea   :  { %v123_v55 = vadd.f32 %v122_v21, %v121_v52 }
 0x4ec   :  { %2854 = vpush %v123_v55 }
 0x51d   :  { %s2855_s19 = spop %2854 }
 0x51e   :  { %v2119_v38 = vstv %s2855_s19 }
 0x51f   :  { %2120 = vst [vmem:[%s3713_s4] sm:$0x1] %v2119_v38 }
 0x541   :  { %v2111_v12 = vpop.xlane.xlu1 %2110 }
 0x542   :  { %v2112_v59 = vrot.slane %v2111_v12, 4 }
 0x544   :  { %v2113_v49 = vadd.f32 %v2112_v59, %v2111_v12 }
 0x546   :  { %v2114_v39 = vrot.slane %v2113_v49, 2 }
 0x548   :  { %v2115_v54 = vadd.f32 %v2114_v39, %v2113_v49 }
 0x54a   :  { %v2116_v56 = vrot.slane %v2115_v54, 1 }
 0x54c   :  { %v2117_v45 = vadd.f32 %v2116_v56, %v2115_v54 }
 0x54e   :  { %2856 = vpush %v2117_v45 }
 0x57f   :  { %s2857_s23 = spop %2856 }
 0x580   :  { %v2121_v57 = vstv %s2857_s23 }
 0x581   :  { %2122 = vst [vmem:[%s3714_s5] sm:$0x1] %v2121_v57 }
 0x582   :  { %2131 = vsyncpa [#allocation3], 1 }
 0x583   :  { %2132 = vsyncpa [#allocation5], 1 }
 0x584   :  { %2133 = vsyncpa [#allocation8], 1 }

</bundles_post_ra>
